<compile_context>
chip_gen: v7x
topology: tpu7x:2x2x1
jax: 0.10.0
libtpu: 0.0.40
codegen_flags: <defaults>
</compile_context>

<pallas_src>
import functools

import jax
import jax.numpy as jnp
from jax.experimental import pallas as pl
from jax.experimental.pallas import tpu as pltpu


# ----------------------------------------------------------------------------
# Generation-aware VMEM budget (v5e/v6e: 128 MiB physical, v7x: 64 MiB).
# ----------------------------------------------------------------------------
def _vmem_limit_bytes():
    phys = 64 * 1024 * 1024  # conservative default = smallest generation (v7x)
    try:
        info = pltpu.get_tpu_info()
        for attr in ("vmem_capacity_bytes", "vmem_size_bytes", "vmem_bytes"):
            v = getattr(info, attr, None)
            if v:
                phys = int(v)
                break
    except Exception:
        pass
    # Leave headroom for compiler-internal scratch; cap at 96 MiB (v5e/v6e),
    # which becomes 48 MiB on a 64 MiB v7x part.
    return min((phys * 3) // 4, 96 * 1024 * 1024)


# ----------------------------------------------------------------------------
# Small-N path: the entire 2-layer forward in a single VMEM-resident kernel.
# ----------------------------------------------------------------------------
def _encoder_fused_kernel(a_ref, x_ref, w1_ref, b1_ref, w2_ref, b2_ref, z_ref):
    a = a_ref[...]                                                    # bf16
    xw1 = jnp.dot(x_ref[...], w1_ref[...],
                  preferred_element_type=jnp.float32).astype(jnp.bfloat16)
    h = jnp.maximum(
        jnp.dot(a, xw1, preferred_element_type=jnp.float32) + b1_ref[...], 0.0
    ).astype(jnp.bfloat16)
    hw2 = jnp.dot(h, w2_ref[...],
                  preferred_element_type=jnp.float32).astype(jnp.bfloat16)
    z = jnp.maximum(
        jnp.dot(a, hw2, preferred_element_type=jnp.float32) + b2_ref[...], 0.0)
    z_ref[...] = z.astype(z_ref.dtype)


def encoder_fused(a, x, w1, b1, w2, b2, *, out_dtype, vmem_limit):
    np_ = a.shape[0]
    fo = w2.shape[1]
    return pl.pallas_call(
        _encoder_fused_kernel,
        out_shape=jax.ShapeDtypeStruct((np_, fo), out_dtype),
        compiler_params=pltpu.CompilerParams(vmem_limit_bytes=vmem_limit),
    )(a, x, w1, b1, w2, b2)


# ----------------------------------------------------------------------------
# Tiled path, kernel 1: feature transform  XW = X @ W  (row-tiled, large tm).
# ----------------------------------------------------------------------------
def _feature_transform_kernel(x_ref, w_ref, o_ref):
    o_ref[...] = jnp.dot(
        x_ref[...], w_ref[...], preferred_element_type=jnp.float32
    ).astype(o_ref.dtype)


def feature_transform(x, w, *, tm, vmem_limit):
    np_, fin = x.shape
    fout = w.shape[1]
    return pl.pallas_call(
        _feature_transform_kernel,
        out_shape=jax.ShapeDtypeStruct((np_, fout), x.dtype),
        grid=(np_ // tm,),
        in_specs=[
            pl.BlockSpec((tm, fin), lambda i: (i, 0)),
            pl.BlockSpec((fin, fout), lambda i: (0, 0)),
        ],
        out_specs=pl.BlockSpec((tm, fout), lambda i: (i, 0)),
        compiler_params=pltpu.CompilerParams(
            dimension_semantics=("parallel",),
            vmem_limit_bytes=vmem_limit,
        ),
    )(x, w)


# ----------------------------------------------------------------------------
# Tiled path, kernel 2: aggregation  relu(A @ Y + b) [@ W_next]
#   - A streamed (tm, tk) tiles, K-tiled over the node axis (grid = (rows, k)).
#   - Y either VMEM-resident (read from HBM once) or streamed (fallback).
#   - bias folded into the f32 accumulator init.
#   - optional fused next-layer transform (relu(acc) @ W_next) in the epilogue.
# ----------------------------------------------------------------------------
def _make_agg_kernel(tk, y_resident, fuse_w):
    def kernel(a_ref, y_ref, b_ref, *rest):
        if fuse_w:
            w_ref, o_ref, acc_ref = rest
        else:
            o_ref, acc_ref = rest
        k = pl.program_id(1)

        @pl.when(k == 0)
        def _():
            acc_ref[...] = jnp.broadcast_to(
                b_ref[...], acc_ref.shape).astype(jnp.float32)

        if y_resident:
            start = pl.multiple_of(k * tk, tk)
            y = y_ref[pl.ds(start, tk), :]
        else:
            y = y_ref[...]
        acc_ref[...] += jnp.dot(a_ref[...], y,
                                preferred_element_type=jnp.float32)

        @pl.when(k == pl.num_programs(1) - 1)
        def _():
            act = jnp.maximum(acc_ref[...], 0.0)
            if fuse_w:
                o_ref[...] = jnp.dot(
                    act.astype(w_ref.dtype), w_ref[...],
                    preferred_element_type=jnp.float32).astype(o_ref.dtype)
            else:
                o_ref[...] = act.astype(o_ref.dtype)

    return kernel


def gcn_aggregate(a, y, b, w=None, *, out_dtype, tm, tk, vmem_limit):
    np_ = a.shape[0]
    f = y.shape[1]
    fuse_w = w is not None
    fo = w.shape[1] if fuse_w else f

    # Resident-Y budget check (assume the pipeline double-buffers inputs).
    est = (2 * np_ * f * 2          # resident Y (bf16), x2 buffers
           + 2 * tm * tk * 2        # adjacency double-buffer
           + tm * f * 4             # f32 accumulator scratch
           + 2 * tm * fo * 4        # output double-buffer (f32 upper bound)
           + (2 * f * fo * 2 if fuse_w else 0)
           + 2 * f * 4)             # bias
    y_resident = est <= int(0.6 * vmem_limit)

    kernel = _make_agg_kernel(tk, y_resident, fuse_w)

    if y_resident:
        y_spec = pl.BlockSpec((np_, f), lambda i, k: (0, 0))   # read once
    else:
        y_spec = pl.BlockSpec((tk, f), lambda i, k: (k, 0))    # streamed fallback

    in_specs = [
        pl.BlockSpec((tm, tk), lambda i, k: (i, k)),            # adjacency tile
        y_spec,                                                 # features
        pl.BlockSpec((1, f), lambda i, k: (0, 0)),              # bias (resident)
    ]
    operands = [a, y, b]
    if fuse_w:
        in_specs.append(pl.BlockSpec((f, fo), lambda i, k: (0, 0)))  # next-layer W
        operands.append(w)

    return pl.pallas_call(
        kernel,
        out_shape=jax.ShapeDtypeStruct((np_, fo), out_dtype),
        grid=(np_ // tm, np_ // tk),
        in_specs=in_specs,
        out_specs=pl.BlockSpec((tm, fo), lambda i, k: (i, 0)),
        scratch_shapes=[pltpu.VMEM((tm, f), jnp.float32)],
        compiler_params=pltpu.CompilerParams(
            dimension_semantics=("parallel", "arbitrary"),
            vmem_limit_bytes=vmem_limit,
        ),
    )(*operands)


# ----------------------------------------------------------------------------
# Plain-JAX glue.
# ----------------------------------------------------------------------------
def build_norm_adj(edge_index, num_nodes, dtype=jnp.float32):
    """Densify edge_index into the GCN-normalized adjacency with self loops.

    Note: duplicate directed edges accumulate weight > 1 (matches the dense
    reference below; data-prep concern, not a kernel one).
    """
    src, dst = edge_index[0], edge_index[1]
    loop = jnp.arange(num_nodes, dtype=edge_index.dtype)
    src = jnp.concatenate([src, loop])
    dst = jnp.concatenate([dst, loop])
    a = jnp.zeros((num_nodes, num_nodes), dtype).at[dst, src].add(1.0)
    deg = a.sum(axis=1)
    dinv = jnp.where(deg > 0, 1.0 / jnp.sqrt(deg), 0.0)
    return (dinv[:, None] * a) * dinv[None, :]


def _round_up(x, m):
    return ((x + m - 1) // m) * m


def _pad2d(a, rows, cols):
    return jnp.pad(a, ((0, rows - a.shape[0]), (0, cols - a.shape[1])))


def _choose_np_and_tiles(n):
    # Big tiles (256/512) with the node count padded so they divide it; this
    # also keeps >= 2 row tiles for the two v7x TensorCores whenever n allows.
    if n >= 1024:
        np_ = _round_up(n, 512)
        tm = tk = 512
    elif n >= 256:
        np_ = _round_up(n, 256)
        tm = tk = 256
    else:
        np_ = _round_up(n, 128)
        tm = tk = 128
    return np_, tm, tk


def encoder_forward(x, edge_index, params, *, path="auto", lane=128):
    """k=2 GCN encoder forward: relu(GCN2(relu(GCN1(x, A)), A))."""
    n, fin = x.shape
    fh = params["w1"].shape[1]       # 2 * out_channels
    fo = params["w2"].shape[1]       # out_channels

    fin_p = _round_up(fin, lane)
    fh_p = _round_up(fh, lane)
    fo_p = _round_up(fo, lane)
    vmem_limit = _vmem_limit_bytes()

    # Everything-resident single-kernel estimate (A dominates).
    np_small = _round_up(n, lane)
    fused_bytes = (2 * np_small * np_small
                   + 2 * np_small * (fin_p + fh_p + fo_p)
                   + 4 * np_small * (fh_p + fo_p)      # f32 temporaries headroom
                   + 2 * (fin_p * fh_p + fh_p * fo_p)
                   + 4 * np_small * fo_p)
    if path == "auto":
        path = "fused" if fused_bytes <= int(0.4 * vmem_limit) else "tiled"

    if path == "fused":
        np_ = np_small
        tm = tk = None
    else:
        np_, tm, tk = _choose_np_and_tiles(n)

    # bf16 operand streams; f32 bias.  Feature dims padded to 128 lanes only.
    a_p = _pad2d(build_norm_adj(edge_index, n, jnp.float32), np_, np_).astype(jnp.bfloat16)
    x_p = _pad2d(x, np_, fin_p).astype(jnp.bfloat16)
    w1_p = _pad2d(params["w1"], fin_p, fh_p).astype(jnp.bfloat16)
    w2_p = _pad2d(params["w2"], fh_p, fo_p).astype(jnp.bfloat16)
    b1_p = _pad2d(params["b1"].reshape(1, -1), 1, fh_p).astype(jnp.float32)
    b2_p = _pad2d(params["b2"].reshape(1, -1), 1, fo_p).astype(jnp.float32)

    if path == "fused":
        z = encoder_fused(a_p, x_p, w1_p, b1_p, w2_p, b2_p,
                          out_dtype=x.dtype, vmem_limit=vmem_limit)
    else:
        # Hoisted X @ W1, then aggregation with layer-2 transform fused into
        # the epilogue, then the final aggregation.
        xw1 = feature_transform(x_p, w1_p, tm=tm, vmem_limit=vmem_limit)
        hw2 = gcn_aggregate(a_p, xw1, b1_p, w2_p, out_dtype=jnp.bfloat16,
                            tm=tm, tk=tk, vmem_limit=vmem_limit)
        z = gcn_aggregate(a_p, hw2, b2_p, None, out_dtype=x.dtype,
                          tm=tm, tk=tk, vmem_limit=vmem_limit)
    return z[:n, :fo]


def encoder_reference(x, edge_index, params):
    """Pure-JAX reference mirroring the kernel's bf16 quantization points."""
    q = lambda t: t.astype(jnp.bfloat16).astype(jnp.float32)
    n = x.shape[0]
    a = q(build_norm_adj(edge_index, n, jnp.float32))
    xw1 = q(jnp.dot(q(x), q(params["w1"])))
    h = q(jnp.maximum(jnp.dot(a, xw1) + params["b1"], 0.0))
    hw2 = q(jnp.dot(h, q(params["w2"])))
    return jnp.maximum(jnp.dot(a, hw2) + params["b2"], 0.0)


def init_params(key, in_channels, out_channels, dtype=jnp.float32):
    hidden = 2 * out_channels
    k1, k2 = jax.random.split(key)

    def glorot(k, fan_in, fan_out):
        lim = jnp.sqrt(6.0 / (fan_in + fan_out)).astype(dtype)
        return jax.random.uniform(k, (fan_in, fan_out), dtype, -lim, lim)

    return {
        "w1": glorot(k1, in_channels, hidden),
        "b1": jnp.zeros((hidden,), dtype),
        "w2": glorot(k2, hidden, out_channels),
        "b2": jnp.zeros((out_channels,), dtype),
    }


if __name__ == "__main__":
    key = jax.random.PRNGKey(0)
    kx, ke, kp = jax.random.split(key, 3)

    N = 300            # nodes
    IN_CH = 32         # in_channels
    OUT_CH = 8         # out_channels (hidden = 16)
    E = 900            # directed edges

    x = jax.random.normal(kx, (N, IN_CH), jnp.float32)
    edge_index = jax.random.randint(ke, (2, E), 0, N, dtype=jnp.int32)
    params = init_params(kp, IN_CH, OUT_CH)

    z_ref = encoder_reference(x, edge_index, params)

    # Exercise both paths: the single fused VMEM-resident kernel (what "auto"
    # picks at this size) and the large-N tiled pipeline.
    fused_fn = jax.jit(functools.partial(encoder_forward, path="fused"))
    tiled_fn = jax.jit(functools.partial(encoder_forward, path="tiled"))

    z_fused = jax.block_until_ready(fused_fn(x, edge_index, params))
    z_tiled = jax.block_until_ready(tiled_fn(x, edge_index, params))

    assert z_fused.shape == (N, OUT_CH)
    assert z_tiled.shape == (N, OUT_CH)
    for name, z in (("fused", z_fused), ("tiled", z_tiled)):
        max_err = float(jnp.max(jnp.abs(z - z_ref)))
        assert jnp.allclose(z, z_ref, atol=2e-2, rtol=2e-2), (
            f"{name} path max abs err {max_err}")

    print("KERNEL_OK")
</pallas_src>

<mosaic_0001>
module attributes {stable_mosaic.version = 11 : i64} {
  func.func private @main(%arg0: i32) attributes {dimension_semantics = [#tpu.dimension_semantics<core_parallel>], iteration_bounds = array<i64: 2>, tpu.core_type = #tpu.core_type<sc_scalar_subcore>, window_params = []} {
    return
  }
}

module attributes {stable_mosaic.version = 11 : i64} {
  func.func private @main(%arg0: i32) attributes {dimension_semantics = [#tpu.dimension_semantics<core_parallel>], iteration_bounds = array<i64: 2>, tpu.core_type = #tpu.core_type<sc_scalar_subcore>, window_params = []} {
    return
  }
}

module attributes {stable_mosaic.version = 11 : i64} {
  func.func @_encoder_fused_kernel(%arg0: memref<384x384xbf16, #tpu.memory_space<vmem>>, %arg1: memref<384x128xbf16, #tpu.memory_space<vmem>>, %arg2: memref<128x128xbf16, #tpu.memory_space<vmem>>, %arg3: memref<1x128xf32, #tpu.memory_space<vmem>>, %arg4: memref<128x128xbf16, #tpu.memory_space<vmem>>, %arg5: memref<1x128xf32, #tpu.memory_space<vmem>>, %arg6: memref<384x128xf32, #tpu.memory_space<vmem>>) attributes {dimension_semantics = [], scalar_prefetch = 0 : i64, scratch_operands = 0 : i64, tpu.core_type = #tpu.core_type<tc>} {
    %c0 = arith.constant 0 : index
    %c0_0 = arith.constant 0 : index
    %0 = vector.load %arg0[%c0, %c0_0] : memref<384x384xbf16, #tpu.memory_space<vmem>>, vector<384x384xbf16>
    %c0_1 = arith.constant 0 : index
    %c0_2 = arith.constant 0 : index
    %1 = vector.load %arg1[%c0_1, %c0_2] : memref<384x128xbf16, #tpu.memory_space<vmem>>, vector<384x128xbf16>
    %c0_3 = arith.constant 0 : index
    %c0_4 = arith.constant 0 : index
    %2 = vector.load %arg2[%c0_3, %c0_4] : memref<128x128xbf16, #tpu.memory_space<vmem>>, vector<128x128xbf16>
    %cst = arith.constant dense<0.000000e+00> : vector<384x128xf32>
    %3 = tpu.matmul %1, %2, %cst {dimension_numbers = #tpu.dot_dimension_numbers<[1], [0], [0], [1], [0, 0, 1, 1], [], []>} : vector<384x128xbf16>, vector<128x128xbf16>, vector<384x128xf32> -> vector<384x128xf32>
    %4 = arith.truncf %3 : vector<384x128xf32> to vector<384x128xbf16>
    %cst_5 = arith.constant dense<0.000000e+00> : vector<384x128xf32>
    %5 = tpu.matmul %0, %4, %cst_5 {dimension_numbers = #tpu.dot_dimension_numbers<[1], [0], [0], [1], [0, 0, 1, 1], [], []>} : vector<384x384xbf16>, vector<384x128xbf16>, vector<384x128xf32> -> vector<384x128xf32>
    %c0_6 = arith.constant 0 : index
    %c0_7 = arith.constant 0 : index
    %6 = vector.load %arg3[%c0_6, %c0_7] : memref<1x128xf32, #tpu.memory_space<vmem>>, vector<1x128xf32>
    %7 = vector.broadcast %6 : vector<1x128xf32> to vector<384x128xf32>
    %8 = arith.addf %5, %7 : vector<384x128xf32>
    %cst_8 = arith.constant 0.000000e+00 : f32
    %9 = vector.broadcast %cst_8 : f32 to vector<384x128xf32>
    %10 = arith.maximumf %8, %9 : vector<384x128xf32>
    %11 = arith.truncf %10 : vector<384x128xf32> to vector<384x128xbf16>
    %c0_9 = arith.constant 0 : index
    %c0_10 = arith.constant 0 : index
    %12 = vector.load %arg4[%c0_9, %c0_10] : memref<128x128xbf16, #tpu.memory_space<vmem>>, vector<128x128xbf16>
    %cst_11 = arith.constant dense<0.000000e+00> : vector<384x128xf32>
    %13 = tpu.matmul %11, %12, %cst_11 {dimension_numbers = #tpu.dot_dimension_numbers<[1], [0], [0], [1], [0, 0, 1, 1], [], []>} : vector<384x128xbf16>, vector<128x128xbf16>, vector<384x128xf32> -> vector<384x128xf32>
    %14 = arith.truncf %13 : vector<384x128xf32> to vector<384x128xbf16>
    %cst_12 = arith.constant dense<0.000000e+00> : vector<384x128xf32>
    %15 = tpu.matmul %0, %14, %cst_12 {dimension_numbers = #tpu.dot_dimension_numbers<[1], [0], [0], [1], [0, 0, 1, 1], [], []>} : vector<384x384xbf16>, vector<384x128xbf16>, vector<384x128xf32> -> vector<384x128xf32>
    %c0_13 = arith.constant 0 : index
    %c0_14 = arith.constant 0 : index
    %16 = vector.load %arg5[%c0_13, %c0_14] : memref<1x128xf32, #tpu.memory_space<vmem>>, vector<1x128xf32>
    %17 = vector.broadcast %16 : vector<1x128xf32> to vector<384x128xf32>
    %18 = arith.addf %15, %17 : vector<384x128xf32>
    %cst_15 = arith.constant 0.000000e+00 : f32
    %19 = vector.broadcast %cst_15 : f32 to vector<384x128xf32>
    %20 = arith.maximumf %18, %19 : vector<384x128xf32>
    %c0_16 = arith.constant 0 : index
    %c0_17 = arith.constant 0 : index
    %21 = vector.load %arg6[%c0_16, %c0_17] : memref<384x128xf32, #tpu.memory_space<vmem>>, vector<384x128xf32>
    tpu.vector_store %arg6[%c0_16, %c0_17], %20 {strides = array<i32>} : memref<384x128xf32, #tpu.memory_space<vmem>>, vector<384x128xf32>,
    return
  }
}

</mosaic_0001>

<bundles_post_ra>
// kernel: encoder_forward.1
= control target key start
LH: loop header
LB: loop body
LE: loop exit
PB: predicated region body
PF: predicated region fallthrough
CT: control target
= control target key end

     0   :  { %v3114_v32 = vmov 0   ;;  %s4075_s2 = inlined_call_operand.vmem [shape: bf16[128,128], index: 2, kind: input, shape index: {}]   ;;  %s4076_s1 = inlined_call_operand.vmem [shape: bf16[384,128], index: 1, kind: input, shape index: {}]   ;;  %s4077_s0 = inlined_call_operand.vmem [shape: bf16[384,384], index: 0, kind: input, shape index: {}]   ;;  %s4078_s4 = inlined_call_operand.vmem [shape: bf16[128,128], index: 4, kind: input, shape index: {}]   ;;  %s4079_s3 = inlined_call_operand.vmem [shape: f32[1,128], index: 3, kind: input, shape index: {}]   ;;  %s4080_s5 = inlined_call_operand.vmem [shape: f32[1,128], index: 5, kind: input, shape index: {}]   ;;  %s4081_s6 = inlined_call_operand.vmem [shape: f32[384,128], index: 6, kind: output, shape index: {}]  }
   0x1   :  { %v2907_v0 = vld [vmem:[%s4075_s2] sm:$0xff]   ;;  %v2908_v1 = vld [vmem:[%s4075_s2 + $0x8] sm:$0xff]   ;;  %v2909_v2 = vld [vmem:[%s4075_s2 + $0x10] sm:$0xff]   ;;  %1016 = vmatprep.subr.bf16.mxu1 %v3114_v32 }
   0x2   :  { %2650 = vmatprep.subr.bf16.mxu0 %v2907_v0  ;;  %v2910_v3 = vld [vmem:[%s4075_s2 + $0x18] sm:$0xff]   ;;  %v2915_v4 = vld [vmem:[%s4076_s1] sm:$0xff]   ;;  %v2912_v6 = vld [vmem:[%s4075_s2 + $0x28] sm:$0xff]  }
   0x3   :  { %2651 = vmatpush3.bf16.msra.mxu0 %v2907_v0  ;;  %2666 = vmatprep.mubr.bf16.mxu0 %v2915_v4  ;;  %v2911_v5 = vld [vmem:[%s4075_s2 + $0x20] sm:$0xff]   ;;  %v2913_v7 = vld [vmem:[%s4075_s2 + $0x30] sm:$0xff]   ;;  %v2914_v8 = vld [vmem:[%s4075_s2 + $0x38] sm:$0xff]  }
   0x4   :  { %2652 = vmatprep.subr.bf16.mxu0 %v2908_v1  ;;  %v2916_v9 = vld [vmem:[%s4076_s1 + $0x8] sm:$0xff]   ;;  %v2917_v10 = vld [vmem:[%s4076_s1 + $0x10] sm:$0xff]   ;;  %v2918_v11 = vld [vmem:[%s4076_s1 + $0x18] sm:$0xff]  }
   0x5   :  { %v2919_v12 = vld [vmem:[%s4076_s1 + $0x20] sm:$0xff]   ;;  %v2920_v13 = vld [vmem:[%s4076_s1 + $0x28] sm:$0xff]   ;;  %v2921_v14 = vld [vmem:[%s4076_s1 + $0x30] sm:$0xff]  }
   0x6   :  { %v2922_v15 = vld [vmem:[%s4076_s1 + $0x38] sm:$0xff]   ;;  %v2923_v16 = vld [vmem:[%s4076_s1 + $0x40] sm:$0xff]   ;;  %v2924_v17 = vld [vmem:[%s4076_s1 + $0x48] sm:$0xff]  }
   0x7   :  { %2653 = vmatpush3.bf16.msra.mxu0 %v2908_v1  ;;  %v2925_v18 = vld [vmem:[%s4076_s1 + $0x50] sm:$0xff]   ;;  %v2926_v19 = vld [vmem:[%s4076_s1 + $0x58] sm:$0xff]   ;;  %v2927_v20 = vld [vmem:[%s4076_s1 + $0x60] sm:$0xff]  }
   0x8   :  { %2654 = vmatprep.subr.bf16.mxu0 %v2909_v2  ;;  %v2928_v21 = vld [vmem:[%s4076_s1 + $0x68] sm:$0xff]   ;;  %v2929_v22 = vld [vmem:[%s4076_s1 + $0x70] sm:$0xff]   ;;  %v2930_v23 = vld [vmem:[%s4076_s1 + $0x78] sm:$0xff]  }
   0x9   :  { %v2931_v24 = vld [vmem:[%s4076_s1 + $0x80] sm:$0xff]   ;;  %v2932_v25 = vld [vmem:[%s4076_s1 + $0x88] sm:$0xff]   ;;  %v2933_v26 = vld [vmem:[%s4076_s1 + $0x90] sm:$0xff]  }
   0xa   :  { %v2934_v27 = vld [vmem:[%s4076_s1 + $0x98] sm:$0xff]   ;;  %v2935_v28 = vld [vmem:[%s4076_s1 + $0xa0] sm:$0xff]   ;;  %v2936_v29 = vld [vmem:[%s4076_s1 + $0xa8] sm:$0xff]  }
   0xb   :  { %2655 = vmatpush3.bf16.msra.mxu0 %v2909_v2  ;;  %v2937_v30 = vld [vmem:[%s4076_s1 + $0xb0] sm:$0xff]   ;;  %v2938_v31 = vld [vmem:[%s4076_s1 + $0xb8] sm:$0xff]  }
   0xc   :  { %2656 = vmatprep.subr.bf16.mxu0 %v2910_v3  ;;  %v3250_v33 = vld [vmem:[%s4077_s0 + $0x4] ss:$12 sps:$4 sm:$0xff]   ;;  %v2945_v34 = vld [vmem:[%s4077_s0 + $0x8] ss:$12 sps:$4 sm:$0xff]  }
   0xd   :  { %1048 = vmatprep.mubr.bf16.mxu1 %v3250_v33 }
   0xf   :  { %2657 = vmatpush3.bf16.msra.mxu0 %v2910_v3 }
  0x10   :  { %2658 = vmatprep.subr.bf16.mxu0 %v2911_v5 }
  0x13   :  { %2659 = vmatpush3.bf16.msra.mxu0 %v2911_v5 }
  0x14   :  { %2660 = vmatprep.subr.bf16.mxu0 %v2912_v6 }
  0x17   :  { %2661 = vmatpush3.bf16.msra.mxu0 %v2912_v6 }
  0x18   :  { %2662 = vmatprep.subr.bf16.mxu0 %v2913_v7 }
  0x1b   :  { %2663 = vmatpush3.bf16.msra.mxu0 %v2913_v7 }
  0x1c   :  { %2664 = vmatprep.subr.bf16.mxu0 %v2914_v8 }
  0x1f   :  { %2665 = vmatpush3.bf16.msra.mxu0 %v2914_v8 }
  0x22   :  { %2667 = vmatmul.mubr.bf16.vlgmr.msra.gmra.mrb[0].mxu0 %v2916_v9 }
  0x23   :  { %2670 = vmatprep.mubr.bf16.mxu0 %v2917_v10 }
  0x2a   :  { %2671 = vmatmul.mubr.bf16.gmra.mrb[4].mxu0 %v2918_v11 }
  0x2b   :  { %2674 = vmatprep.mubr.bf16.mxu0 %v2919_v12 }
  0x32   :  { %2675 = vmatmul.mubr.bf16.gmra.mrb[8].mxu0 %v2920_v13 }
  0x33   :  { %2678 = vmatprep.mubr.bf16.mxu0 %v2921_v14 }
  0x3a   :  { %2679 = vmatmul.mubr.bf16.gmra.mrb[12].mxu0 %v2922_v15 }
  0x3b   :  { %2682 = vmatprep.mubr.bf16.mxu0 %v2923_v16 }
  0x42   :  { %2683 = vmatmul.mubr.bf16.gmra.mrb[16].mxu0 %v2924_v17 }
  0x43   :  { %2686 = vmatprep.mubr.bf16.mxu0 %v2925_v18 }
  0x4a   :  { %2687 = vmatmul.mubr.bf16.gmra.mrb[20].mxu0 %v2926_v19 }
  0x4b   :  { %2690 = vmatprep.mubr.bf16.mxu0 %v2927_v20 }
  0x52   :  { %2691 = vmatmul.mubr.bf16.gmra.mrb[24].mxu0 %v2928_v21  ;;  %v2939_v21 = vld [vmem:[%s4077_s0] ss:$12 sps:$4 sm:$0xff]  }
  0x53   :  { %2694 = vmatprep.mubr.bf16.mxu0 %v2929_v22 }
  0x5a   :  { %2695 = vmatmul.mubr.bf16.gmra.mrb[28].mxu0 %v2930_v23  ;;  %v2942_v23 = vld [vmem:[%s4077_s0 + $0x1c] ss:$12 sps:$4 sm:$0xff]  }
  0x5b   :  { %2698 = vmatprep.mubr.bf16.mxu0 %v2931_v24 }
  0x62   :  { %2699 = vmatmul.mubr.bf16.gmra.mrb[32].mxu0 %v2932_v25 }
  0x63   :  { %2702 = vmatprep.mubr.bf16.mxu0 %v2933_v26 }
  0x6a   :  { %2703 = vmatmul.mubr.bf16.gmra.mrb[36].mxu0 %v2934_v27 }
  0x6b   :  { %2706 = vmatprep.mubr.bf16.mxu0 %v2935_v28 }
  0x72   :  { %2707 = vmatmul.mubr.bf16.gmra.mrb[40].mxu0 %v2936_v29  ;;  %v2944_v29 = vld [vmem:[%s4077_s0 + $0x18] ss:$12 sps:$4 sm:$0xff]  }
  0x73   :  { %2710 = vmatprep.mubr.bf16.mxu0 %v2937_v30 }
  0x7a   :  { %2711 = vmatmul.mubr.bf16.gmra.mrb[44].mxu0 %v2938_v31  ;;  %v2947_v31 = vld [vmem:[%s4077_s0 + $0x34] ss:$12 sps:$4 sm:$0xff]  }
  0x7b   :  { %2730 = vmatprep.mubr.bf16.mxu0 %v2945_v34 }
  0xf5   :  { %v2668_v35 = vpop.f32.mrb[0].mxu0 }
  0xf6   :  { %v410_v36 = vpop.f32.mrb[1].mxu0 }
  0xf7   :  { %v2669_v37 = vpop.f32.mrb[2].mxu0 }
  0xf8   :  { %v602_v38 = vpack.c.bf16 %v2669_v37, %v2668_v35  ;;  %v413_v39 = vpop.f32.mrb[3].mxu0 }
  0xf9   :  { %v601_v40 = vpack.c.bf16 %v413_v39, %v410_v36  ;;  %v2949_v39 = vld [vmem:[%s4077_s0 + $0x30] ss:$12 sps:$4 sm:$0xff]  }
  0xfb   :  { %1017 = vmatpush1.bf16.msra.mxu1 %v601_v40 }
  0xfc   :  { %1018 = vmatprep.subr.bf16.mxu1 %v3114_v32 }
  0xfd   :  { %v2672_v41 = vpop.f32.mrb[4].mxu0 }
  0xfe   :  { %v426_v42 = vpop.f32.mrb[5].mxu0 }
  0xff   :  { %v2673_v43 = vpop.f32.mrb[6].mxu0  ;;  %1019 = vmatpush1.bf16.msra.mxu1 %v602_v38 }
 0x100   :  { %v604_v44 = vpack.c.bf16 %v2673_v43, %v2672_v41  ;;  %v429_v45 = vpop.f32.mrb[7].mxu0  ;;  %1020 = vmatprep.subr.bf16.mxu1 %v3114_v32  ;;  %v2950_v41 = vld [vmem:[%s4077_s0 + $0x4c] ss:$12 sps:$4 sm:$0xff]  }
 0x101   :  { %v603_v46 = vpack.c.bf16 %v429_v45, %v426_v42 }
 0x103   :  { %1021 = vmatpush1.bf16.msra.mxu1 %v603_v46 }
 0x104   :  { %1022 = vmatprep.subr.bf16.mxu1 %v3114_v32 }
 0x105   :  { %v2676_v47 = vpop.f32.mrb[8].mxu0 }
 0x106   :  { %v442_v48 = vpop.f32.mrb[9].mxu0 }
 0x107   :  { %v2677_v49 = vpop.f32.mrb[10].mxu0  ;;  %1023 = vmatpush1.bf16.msra.mxu1 %v604_v44 }
 0x108   :  { %v606_v50 = vpack.c.bf16 %v2677_v49, %v2676_v47  ;;  %v445_v51 = vpop.f32.mrb[11].mxu0  ;;  %1024 = vmatprep.subr.bf16.mxu1 %v3114_v32  ;;  %v2953_v47 = vld [vmem:[%s4077_s0 + $0x48] ss:$12 sps:$4 sm:$0xff]   ;;  %v2955_v49 = vld [vmem:[%s4077_s0 + $0x64] ss:$12 sps:$4 sm:$0xff]  }
 0x109   :  { %v605_v52 = vpack.c.bf16 %v445_v51, %v442_v48 }
 0x10b   :  { %1025 = vmatpush1.bf16.msra.mxu1 %v605_v52 }
 0x10c   :  { %1026 = vmatprep.subr.bf16.mxu1 %v3114_v32 }
 0x10d   :  { %v2680_v53 = vpop.f32.mrb[12].mxu0 }
 0x10e   :  { %v458_v54 = vpop.f32.mrb[13].mxu0 }
 0x10f   :  { %v2681_v55 = vpop.f32.mrb[14].mxu0  ;;  %1027 = vmatpush1.bf16.msra.mxu1 %v606_v50 }
 0x110   :  { %v608_v56 = vpack.c.bf16 %v2681_v55, %v2680_v53  ;;  %v461_v57 = vpop.f32.mrb[15].mxu0  ;;  %1028 = vmatprep.subr.bf16.mxu1 %v3114_v32  ;;  %v2957_v53 = vld [vmem:[%s4077_s0 + $0x60] ss:$12 sps:$4 sm:$0xff]   ;;  %v2958_v55 = vld [vmem:[%s4077_s0 + $0x7c] ss:$12 sps:$4 sm:$0xff]  }
 0x111   :  { %v607_v58 = vpack.c.bf16 %v461_v57, %v458_v54  ;;  %v2946_v54 = vld [vmem:[%s4077_s0 + $0x20] ss:$12 sps:$4 sm:$0xff]   ;;  %v2961_v57 = vld [vmem:[%s4077_s0 + $0x78] ss:$12 sps:$4 sm:$0xff]  }
 0x113   :  { %1029 = vmatpush1.bf16.msra.mxu1 %v607_v58  ;;  %v2954_v58 = vld [vmem:[%s4077_s0 + $0x50] ss:$12 sps:$4 sm:$0xff]  }
 0x114   :  { %1030 = vmatprep.subr.bf16.mxu1 %v3114_v32 }
 0x115   :  { %v2684_v59 = vpop.f32.mrb[16].mxu0 }
 0x116   :  { %v474_v60 = vpop.f32.mrb[17].mxu0 }
 0x117   :  { %v2685_v61 = vpop.f32.mrb[18].mxu0  ;;  %1031 = vmatpush1.bf16.msra.mxu1 %v608_v56  ;;  %v2952_v56 = vld [vmem:[%s4077_s0 + $0x38] ss:$12 sps:$4 sm:$0xff]  }
 0x118   :  { %v610_v62 = vpack.c.bf16 %v2685_v61, %v2684_v59  ;;  %v477_v63 = vpop.f32.mrb[19].mxu0  ;;  %1032 = vmatprep.subr.bf16.mxu1 %v3114_v32  ;;  %v2963_v59 = vld [vmem:[%s4077_s0 + $0x94] ss:$12 sps:$4 sm:$0xff]   ;;  %v2965_v61 = vld [vmem:[%s4077_s0 + $0x90] ss:$12 sps:$4 sm:$0xff]  }
 0x119   :  { %v609_v0 = vpack.c.bf16 %v477_v63, %v474_v60  ;;  %v2960_v60 = vld [vmem:[%s4077_s0 + $0x68] ss:$12 sps:$4 sm:$0xff]   ;;  %v2966_v63 = vld [vmem:[%s4077_s0 + $0xac] ss:$12 sps:$4 sm:$0xff]  }
 0x11b   :  { %1033 = vmatpush1.bf16.msra.mxu1 %v609_v0  ;;  %v2969_v0 = vld [vmem:[%s4077_s0 + $0x98] ss:$12 sps:$4 sm:$0xff]  }
 0x11c   :  { %1034 = vmatprep.subr.bf16.mxu1 %v3114_v32 }
 0x11d   :  { %v2688_v1 = vpop.f32.mrb[20].mxu0 }
 0x11e   :  { %v490_v2 = vpop.f32.mrb[21].mxu0 }
 0x11f   :  { %v2689_v3 = vpop.f32.mrb[22].mxu0  ;;  %1035 = vmatpush1.bf16.msra.mxu1 %v610_v62  ;;  %v2962_v62 = vld [vmem:[%s4077_s0 + $0x80] ss:$12 sps:$4 sm:$0xff]  }
 0x120   :  { %v612_v4 = vpack.c.bf16 %v2689_v3, %v2688_v1  ;;  %v493_v5 = vpop.f32.mrb[23].mxu0  ;;  %1036 = vmatprep.subr.bf16.mxu1 %v3114_v32  ;;  %v2968_v1 = vld [vmem:[%s4077_s0 + $0xa8] ss:$12 sps:$4 sm:$0xff]   ;;  %v2971_v3 = vld [vmem:[%s4077_s0 + $0xc4] ss:$12 sps:$4 sm:$0xff]  }
 0x121   :  { %v611_v6 = vpack.c.bf16 %v493_v5, %v490_v2  ;;  %v2970_v2 = vld [vmem:[%s4077_s0 + $0xb0] ss:$12 sps:$4 sm:$0xff]   ;;  %v3035_v5 = vld [vmem:[%s4078_s4] sm:$0xff]  }
 0x123   :  { %1037 = vmatpush1.bf16.msra.mxu1 %v611_v6  ;;  %v2973_v6 = vld [vmem:[%s4077_s0 + $0xc0] ss:$12 sps:$4 sm:$0xff]  }
 0x124   :  { %1038 = vmatprep.subr.bf16.mxu1 %v3114_v32 }
 0x125   :  { %v2692_v7 = vpop.f32.mrb[24].mxu0 }
 0x126   :  { %v506_v8 = vpop.f32.mrb[25].mxu0 }
 0x127   :  { %v2693_v9 = vpop.f32.mrb[26].mxu0  ;;  %1039 = vmatpush1.bf16.msra.mxu1 %v612_v4  ;;  %v2980_v4 = vld [vmem:[%s4077_s0 + $0xc8] ss:$12 sps:$4 sm:$0xff]  }
 0x128   :  { %v614_v10 = vpack.c.bf16 %v2693_v9, %v2692_v7  ;;  %v509_v11 = vpop.f32.mrb[27].mxu0  ;;  %1040 = vmatprep.subr.bf16.mxu1 %v3114_v32  ;;  %v3036_v7 = vld [vmem:[%s4078_s4 + $0x8] sm:$0xff]  }
 0x129   :  { %v613_v12 = vpack.c.bf16 %v509_v11, %v506_v8  ;;  %v2974_v8 = vld [vmem:[%s4077_s0 + $0xdc] ss:$12 sps:$4 sm:$0xff]   ;;  %v2981_v9 = vld [vmem:[%s4077_s0 + $0xe0] ss:$12 sps:$4 sm:$0xff]   ;;  %v3037_v11 = vld [vmem:[%s4078_s4 + $0x10] sm:$0xff]  }
 0x12b   :  { %1041 = vmatpush1.bf16.msra.mxu1 %v613_v12  ;;  %v2976_v12 = vld [vmem:[%s4077_s0 + $0xd8] ss:$12 sps:$4 sm:$0xff]  }
 0x12c   :  { %1042 = vmatprep.subr.bf16.mxu1 %v3114_v32 }
 0x12d   :  { %v2696_v13 = vpop.f32.mrb[28].mxu0 }
 0x12e   :  { %v522_v14 = vpop.f32.mrb[29].mxu0 }
 0x12f   :  { %v2697_v15 = vpop.f32.mrb[30].mxu0  ;;  %1043 = vmatpush1.bf16.msra.mxu1 %v614_v10  ;;  %v2991_v10 = vld [vmem:[%s4077_s0 + $0xf8] ss:$12 sps:$4 sm:$0xff]  }
 0x130   :  { %v616_v16 = vpack.c.bf16 %v2697_v15, %v2696_v13  ;;  %v525_v17 = vpop.f32.mrb[31].mxu0  ;;  %1044 = vmatprep.subr.bf16.mxu1 %v3114_v32  ;;  %v2977_v13 = vld [vmem:[%s4077_s0 + $0xf4] ss:$12 sps:$4 sm:$0xff]  }
 0x131   :  { %v615_v18 = vpack.c.bf16 %v525_v17, %v522_v14  ;;  %v2992_v14 = vld [vmem:[%s4077_s0 + $0x110] ss:$12 sps:$4 sm:$0xff]   ;;  %v3002_v15 = vld [vmem:[%s4077_s0 + $0x128] ss:$12 sps:$4 sm:$0xff]   ;;  %v2982_v17 = vld [vmem:[%s4077_s0 + $0x10c] ss:$12 sps:$4 sm:$0xff]  }
 0x133   :  { %1045 = vmatpush1.bf16.msra.mxu1 %v615_v18  ;;  %v3003_v18 = vld [vmem:[%s4077_s0 + $0x140] ss:$12 sps:$4 sm:$0xff]  }
 0x134   :  { %1046 = vmatprep.subr.bf16.mxu1 %v3114_v32 }
 0x135   :  { %v2700_v19 = vpop.f32.mrb[32].mxu0 }
 0x136   :  { %v538_v20 = vpop.f32.mrb[33].mxu0 }
 0x137   :  { %v2701_v22 = vpop.f32.mrb[34].mxu0  ;;  %1047 = vmatpush1.bf16.msra.mxu1 %v616_v16  ;;  %v2979_v16 = vld [vmem:[%s4077_s0 + $0xf0] ss:$12 sps:$4 sm:$0xff]  }
 0x138   :  { %v618_v24 = vpack.c.bf16 %v2701_v22, %v2700_v19  ;;  %v541_v25 = vpop.f32.mrb[35].mxu0  ;;  %1858 = vmatprep.subr.bf16.mxu1 %v3114_v32  ;;  %v3012_v19 = vld [vmem:[%s4077_s0 + $0x158] ss:$12 sps:$4 sm:$0xff]   ;;  %v3014_v22 = vld [vmem:[%s4077_s0 + $0x170] ss:$12 sps:$4 sm:$0xff]  }
 0x139   :  { %v617_v26 = vpack.c.bf16 %v541_v25, %v538_v20  ;;  %v2984_v20 = vld [vmem:[%s4077_s0 + $0x108] ss:$12 sps:$4 sm:$0xff]   ;;  %v3039_v25 = vld [vmem:[%s4078_s4 + $0x20] sm:$0xff]  }
 0x13a   :  { %1049 = vmatmul.mubr.bf16.vlgmr.msra.gmra.mrb[0].mxu1 %v2939_v21  ;;  %v2985_v21 = vld [vmem:[%s4077_s0 + $0x124] ss:$12 sps:$4 sm:$0xff]  }
 0x13b   :  { %2714 = vmatprep.subr.bf16.mxu0 %v617_v26  ;;  %1056 = vmatprep.mubr.bf16.mxu1 %v2942_v23  ;;  %v3017_v23 = vld [vmem:[%s4077_s0 + $0x188] ss:$12 sps:$4 sm:$0xff]  }
 0x13c   :  { %2715 = vmatpush3.bf16.msra.mxu0 %v617_v26  ;;  %v2987_v26 = vld [vmem:[%s4077_s0 + $0x120] ss:$12 sps:$4 sm:$0xff]  }
 0x13d   :  { %v2704_v27 = vpop.f32.mrb[36].mxu0  ;;  %2716 = vmatprep.subr.bf16.mxu0 %v618_v24 }
 0x13e   :  { %v554_v28 = vpop.f32.mrb[37].mxu0 }
 0x13f   :  { %v2705_v30 = vpop.f32.mrb[38].mxu0 }
 0x140   :  { %v620_v34 = vpack.c.bf16 %v2705_v30, %v2704_v27  ;;  %v557_v35 = vpop.f32.mrb[39].mxu0  ;;  %2717 = vmatpush3.bf16.msra.mxu0 %v618_v24  ;;  %v3038_v24 = vld [vmem:[%s4078_s4 + $0x18] sm:$0xff]   ;;  %v3040_v30 = vld [vmem:[%s4078_s4 + $0x28] sm:$0xff]  }
 0x141   :  { %v619_v36 = vpack.c.bf16 %v557_v35, %v554_v28  ;;  %v2988_v27 = vld [vmem:[%s4077_s0 + $0x13c] ss:$12 sps:$4 sm:$0xff]   ;;  %v3019_v28 = vld [vmem:[%s4077_s0 + $0x1a0] ss:$12 sps:$4 sm:$0xff]  }
 0x142   :  { %1057 = vmatmul.mubr.bf16.gmra.mrb[4].mxu1 %v2944_v29  ;;  %v3022_v29 = vld [vmem:[%s4077_s0 + $0x1b8] ss:$12 sps:$4 sm:$0xff]   ;;  %v3024_v35 = vld [vmem:[%s4077_s0 + $0x1d0] ss:$12 sps:$4 sm:$0xff]  }
 0x143   :  { %2718 = vmatprep.subr.bf16.mxu0 %v619_v36  ;;  %1064 = vmatprep.mubr.bf16.mxu1 %v2947_v31  ;;  %v2990_v31 = vld [vmem:[%s4077_s0 + $0x138] ss:$12 sps:$4 sm:$0xff]  }
 0x144   :  { %2719 = vmatpush3.bf16.msra.mxu0 %v619_v36  ;;  %v3027_v36 = vld [vmem:[%s4077_s0 + $0x1e8] ss:$12 sps:$4 sm:$0xff]  }
 0x145   :  { %v2708_v37 = vpop.f32.mrb[40].mxu0  ;;  %2720 = vmatprep.subr.bf16.mxu0 %v620_v34 }
 0x146   :  { %v570_v38 = vpop.f32.mrb[41].mxu0 }
 0x147   :  { %v2709_v40 = vpop.f32.mrb[42].mxu0 }
 0x148   :  { %v622_v42 = vpack.c.bf16 %v2709_v40, %v2708_v37  ;;  %v573_v43 = vpop.f32.mrb[43].mxu0  ;;  %2721 = vmatpush3.bf16.msra.mxu0 %v620_v34  ;;  %v2993_v34 = vld [vmem:[%s4077_s0 + $0x154] ss:$12 sps:$4 sm:$0xff]   ;;  %v2995_v37 = vld [vmem:[%s4077_s0 + $0x150] ss:$12 sps:$4 sm:$0xff]  }
 0x149   :  { %v621_v44 = vpack.c.bf16 %v573_v43, %v570_v38  ;;  %v2996_v38 = vld [vmem:[%s4077_s0 + $0x16c] ss:$12 sps:$4 sm:$0xff]   ;;  %v3034_v43 = vld [vmem:[%s4077_s0 + $0x230] ss:$12 sps:$4 sm:$0xff]  }
 0x14a   :  { %1065 = vmatmul.mubr.bf16.gmra.mrb[8].mxu1 %v2949_v39  ;;  %v3029_v39 = vld [vmem:[%s4077_s0 + $0x200] ss:$12 sps:$4 sm:$0xff]   ;;  %v3032_v40 = vld [vmem:[%s4077_s0 + $0x218] ss:$12 sps:$4 sm:$0xff]  }
 0x14b   :  { %2722 = vmatprep.subr.bf16.mxu0 %v621_v44  ;;  %1072 = vmatprep.mubr.bf16.mxu1 %v2950_v41  ;;  %v2998_v41 = vld [vmem:[%s4077_s0 + $0x168] ss:$12 sps:$4 sm:$0xff]  }
 0x14c   :  { %2723 = vmatpush3.bf16.msra.mxu0 %v621_v44  ;;  %v3041_v44 = vld [vmem:[%s4078_s4 + $0x30] sm:$0xff]  }
 0x14d   :  { %v2712_v45 = vpop.f32.mrb[44].mxu0  ;;  %2724 = vmatprep.subr.bf16.mxu0 %v622_v42 }
 0x14e   :  { %v586_v46 = vpop.f32.mrb[45].mxu0 }
 0x14f   :  { %v2713_v48 = vpop.f32.mrb[46].mxu0 }
 0x150   :  { %v624_v50 = vpack.c.bf16 %v2713_v48, %v2712_v45  ;;  %v589_v51 = vpop.f32.mrb[47].mxu0  ;;  %2725 = vmatpush3.bf16.msra.mxu0 %v622_v42  ;;  %v2999_v42 = vld [vmem:[%s4077_s0 + $0x184] ss:$12 sps:$4 sm:$0xff]   ;;  %v3042_v45 = vld [vmem:[%s4078_s4 + $0x38] sm:$0xff]  }
 0x151   :  { %v623_v52 = vpack.c.bf16 %v589_v51, %v586_v46  ;;  %v3001_v46 = vld [vmem:[%s4077_s0 + $0x180] ss:$12 sps:$4 sm:$0xff]   ;;  %v3006_v48 = vld [vmem:[%s4077_s0 + $0x198] ss:$12 sps:$4 sm:$0xff]  }
 0x152   :  { %1073 = vmatmul.mubr.bf16.gmra.mrb[12].mxu1 %v2953_v47  ;;  %v3004_v47 = vld [vmem:[%s4077_s0 + $0x19c] ss:$12 sps:$4 sm:$0xff]   ;;  %v3010_v51 = vld [vmem:[%s4077_s0 + $0x1cc] ss:$12 sps:$4 sm:$0xff]  }
 0x153   :  { %2726 = vmatprep.subr.bf16.mxu0 %v623_v52  ;;  %1080 = vmatprep.mubr.bf16.mxu1 %v2955_v49  ;;  %v3007_v49 = vld [vmem:[%s4077_s0 + $0x1b4] ss:$12 sps:$4 sm:$0xff]  }
 0x154   :  { %2727 = vmatpush3.bf16.msra.mxu0 %v623_v52  ;;  %v3013_v52 = vld [vmem:[%s4077_s0 + $0x1c8] ss:$12 sps:$4 sm:$0xff]  }
 0x155   :  { %2728 = vmatprep.subr.bf16.mxu0 %v624_v50 }
 0x158   :  { %2729 = vmatpush3.bf16.msra.mxu0 %v624_v50  ;;  %v3009_v50 = vld [vmem:[%s4077_s0 + $0x1b0] ss:$12 sps:$4 sm:$0xff]  }
 0x159   :  { %2778 = vmatprep.subr.bf16.mxu0 %v3035_v5 }
 0x15a   :  { %1081 = vmatmul.mubr.bf16.gmra.mrb[16].mxu1 %v2957_v53  ;;  %v3015_v53 = vld [vmem:[%s4077_s0 + $0x1e4] ss:$12 sps:$4 sm:$0xff]  }
 0x15b   :  { %2731 = vmatmul.mubr.bf16.vlgmr.msra.gmra.mrb[48].mxu0 %v2946_v54  ;;  %1088 = vmatprep.mubr.bf16.mxu1 %v2958_v55  ;;  %v3018_v54 = vld [vmem:[%s4077_s0 + $0x1e0] ss:$12 sps:$4 sm:$0xff]   ;;  %v3020_v55 = vld [vmem:[%s4077_s0 + $0x1fc] ss:$12 sps:$4 sm:$0xff]  }
 0x15c   :  { %2734 = vmatprep.mubr.bf16.mxu0 %v2952_v56  ;;  %2779 = vmatpush3.bf16.msra.mxu0 %v3035_v5  ;;  %v3023_v56 = vld [vmem:[%s4077_s0 + $0x1f8] ss:$12 sps:$4 sm:$0xff]  }
 0x15d   :  { %2780 = vmatprep.subr.bf16.mxu0 %v3036_v7 }
 0x160   :  { %2781 = vmatpush3.bf16.msra.mxu0 %v3036_v7 }
 0x161   :  { %2782 = vmatprep.subr.bf16.mxu0 %v3037_v11 }
 0x162   :  { %1089 = vmatmul.mubr.bf16.gmra.mrb[20].mxu1 %v2961_v57  ;;  %v3025_v57 = vld [vmem:[%s4077_s0 + $0x214] ss:$12 sps:$4 sm:$0xff]  }
 0x163   :  { %2735 = vmatmul.mubr.bf16.gmra.mrb[52].mxu0 %v2954_v58  ;;  %1096 = vmatprep.mubr.bf16.mxu1 %v2963_v59  ;;  %v3028_v58 = vld [vmem:[%s4077_s0 + $0x210] ss:$12 sps:$4 sm:$0xff]   ;;  %v3030_v59 = vld [vmem:[%s4077_s0 + $0x22c] ss:$12 sps:$4 sm:$0xff]  }
 0x164   :  { %2738 = vmatprep.mubr.bf16.mxu0 %v2960_v60  ;;  %2783 = vmatpush3.bf16.msra.mxu0 %v3037_v11  ;;  %v3033_v60 = vld [vmem:[%s4077_s0 + $0x228] ss:$12 sps:$4 sm:$0xff]  }
 0x165   :  { %2784 = vmatprep.subr.bf16.mxu0 %v3038_v24 }
 0x168   :  { %2785 = vmatpush3.bf16.msra.mxu0 %v3038_v24 }
 0x169   :  { %2786 = vmatprep.subr.bf16.mxu0 %v3039_v25 }
 0x16a   :  { %1097 = vmatmul.mubr.bf16.gmra.mrb[24].mxu1 %v2965_v61 }
 0x16b   :  { %2739 = vmatmul.mubr.bf16.gmra.mrb[56].mxu0 %v2962_v62  ;;  %1104 = vmatprep.mubr.bf16.mxu1 %v2966_v63 }
 0x16c   :  { %2742 = vmatprep.mubr.bf16.mxu0 %v2969_v0  ;;  %2787 = vmatpush3.bf16.msra.mxu0 %v3039_v25 }
 0x16d   :  { %2788 = vmatprep.subr.bf16.mxu0 %v3040_v30 }
 0x170   :  { %2789 = vmatpush3.bf16.msra.mxu0 %v3040_v30 }
 0x171   :  { %2790 = vmatprep.subr.bf16.mxu0 %v3041_v44 }
 0x172   :  { %1105 = vmatmul.mubr.bf16.gmra.mrb[28].mxu1 %v2968_v1 }
 0x173   :  { %2743 = vmatmul.mubr.bf16.gmra.mrb[60].mxu0 %v2970_v2  ;;  %1112 = vmatprep.mubr.bf16.mxu1 %v2971_v3 }
 0x174   :  { %2746 = vmatprep.mubr.bf16.mxu0 %v2980_v4  ;;  %2791 = vmatpush3.bf16.msra.mxu0 %v3041_v44 }
 0x175   :  { %2792 = vmatprep.subr.bf16.mxu0 %v3042_v45 }
 0x178   :  { %2793 = vmatpush3.bf16.msra.mxu0 %v3042_v45 }
 0x17a   :  { %1113 = vmatmul.mubr.bf16.gmra.mrb[32].mxu1 %v2973_v6 }
 0x17b   :  { %1120 = vmatprep.mubr.bf16.mxu1 %v2974_v8  ;;  %2747 = vmatmul.mubr.bf16.gmra.mrb[64].mxu0 %v2981_v9 }
 0x17c   :  { %2750 = vmatprep.mubr.bf16.mxu0 %v2991_v10 }
 0x182   :  { %1121 = vmatmul.mubr.bf16.gmra.mrb[36].mxu1 %v2976_v12 }
 0x183   :  { %1128 = vmatprep.mubr.bf16.mxu1 %v2977_v13  ;;  %2751 = vmatmul.mubr.bf16.gmra.mrb[68].mxu0 %v2992_v14 }
 0x184   :  { %2754 = vmatprep.mubr.bf16.mxu0 %v3002_v15 }
 0x18a   :  { %1129 = vmatmul.mubr.bf16.gmra.mrb[40].mxu1 %v2979_v16 }
 0x18b   :  { %1136 = vmatprep.mubr.bf16.mxu1 %v2982_v17  ;;  %2755 = vmatmul.mubr.bf16.gmra.mrb[72].mxu0 %v3003_v18 }
 0x18c   :  { %2758 = vmatprep.mubr.bf16.mxu0 %v3012_v19 }
 0x192   :  { %1137 = vmatmul.mubr.bf16.gmra.mrb[44].mxu1 %v2984_v20 }
 0x193   :  { %1144 = vmatprep.mubr.bf16.mxu1 %v2985_v21  ;;  %2759 = vmatmul.mubr.bf16.gmra.mrb[76].mxu0 %v3014_v22 }
 0x194   :  { %2762 = vmatprep.mubr.bf16.mxu0 %v3017_v23 }
 0x19a   :  { %1145 = vmatmul.mubr.bf16.gmra.mrb[48].mxu1 %v2987_v26 }
 0x19b   :  { %1152 = vmatprep.mubr.bf16.mxu1 %v2988_v27  ;;  %2763 = vmatmul.mubr.bf16.gmra.mrb[80].mxu0 %v3019_v28 }
 0x19c   :  { %2766 = vmatprep.mubr.bf16.mxu0 %v3022_v29 }
 0x1a2   :  { %1153 = vmatmul.mubr.bf16.gmra.mrb[52].mxu1 %v2990_v31 }
 0x1a3   :  { %1160 = vmatprep.mubr.bf16.mxu1 %v2993_v34  ;;  %2767 = vmatmul.mubr.bf16.gmra.mrb[84].mxu0 %v3024_v35 }
 0x1a4   :  { %2770 = vmatprep.mubr.bf16.mxu0 %v3027_v36 }
 0x1aa   :  { %1161 = vmatmul.mubr.bf16.gmra.mrb[56].mxu1 %v2995_v37 }
 0x1ab   :  { %1168 = vmatprep.mubr.bf16.mxu1 %v2996_v38  ;;  %2771 = vmatmul.mubr.bf16.gmra.mrb[88].mxu0 %v3029_v39 }
 0x1ac   :  { %2774 = vmatprep.mubr.bf16.mxu0 %v3032_v40 }
 0x1b2   :  { %1169 = vmatmul.mubr.bf16.gmra.mrb[60].mxu1 %v2998_v41 }
 0x1b3   :  { %1176 = vmatprep.mubr.bf16.mxu1 %v2999_v42  ;;  %2775 = vmatmul.mubr.bf16.gmra.mrb[92].mxu0 %v3034_v43 }
 0x1ba   :  { %1177 = vmatmul.mubr.bf16.gmra.mrb[64].mxu1 %v3001_v46 }
 0x1bb   :  { %1184 = vmatprep.mubr.bf16.mxu1 %v3004_v47 }
 0x1c2   :  { %1185 = vmatmul.mubr.bf16.gmra.mrb[68].mxu1 %v3006_v48 }
 0x1c3   :  { %1192 = vmatprep.mubr.bf16.mxu1 %v3007_v49 }
 0x1ca   :  { %1193 = vmatmul.mubr.bf16.gmra.mrb[72].mxu1 %v3009_v50 }
 0x1cb   :  { %1200 = vmatprep.mubr.bf16.mxu1 %v3010_v51 }
 0x1d2   :  { %1201 = vmatmul.mubr.bf16.gmra.mrb[76].mxu1 %v3013_v52 }
 0x1d3   :  { %1208 = vmatprep.mubr.bf16.mxu1 %v3015_v53 }
 0x1da   :  { %1209 = vmatmul.mubr.bf16.gmra.mrb[80].mxu1 %v3018_v54 }
 0x1db   :  { %1216 = vmatprep.mubr.bf16.mxu1 %v3020_v55 }
 0x1e2   :  { %1217 = vmatmul.mubr.bf16.gmra.mrb[84].mxu1 %v3023_v56 }
 0x1e3   :  { %1224 = vmatprep.mubr.bf16.mxu1 %v3025_v57 }
 0x1ea   :  { %1225 = vmatmul.mubr.bf16.gmra.mrb[88].mxu1 %v3028_v58 }
 0x1eb   :  { %1232 = vmatprep.mubr.bf16.mxu1 %v3030_v59 }
 0x1f2   :  { %1233 = vmatmul.mubr.bf16.gmra.mrb[92].mxu1 %v3033_v60 }
 0x1f3   :  { %1890 = vmatprep.mubr.bf16.mxu1 %v3250_v33  ;;  %v3510_v33 = vld [vmem:[%s4079_s3] ss:$0 sm:$0xff] }
 0x20d   :  { %v1050_v61 = vpop.f32.mrb[0].mxu1 }
 0x20e   :  { %v1052_v62 = vpop.f32.mrb[1].mxu1  ;;  %v1051_v15 = vadd.f32 %v3510_v33, %v1050_v61 }
 0x20f   :  { %v1053_v63 = vpop.f32.mrb[2].mxu1 }
 0x210   :  { %v1055_v0 = vpop.f32.mrb[3].mxu1  ;;  %v1054_v22 = vadd.f32 %v3510_v33, %v1053_v63 }
 0x215   :  { %v1058_v1 = vpop.f32.mrb[4].mxu1 }
 0x216   :  { %v1060_v2 = vpop.f32.mrb[5].mxu1  ;;  %v1059_v13 = vadd.f32 %v3510_v33, %v1058_v1 }
 0x217   :  { %v1061_v3 = vpop.f32.mrb[6].mxu1 }
 0x218   :  { %v1063_v4 = vpop.f32.mrb[7].mxu1  ;;  %v1062_v18 = vadd.f32 %v3510_v33, %v1061_v3 }
 0x21d   :  { %v1066_v5 = vpop.f32.mrb[8].mxu1 }
 0x21e   :  { %v1068_v6 = vpop.f32.mrb[9].mxu1  ;;  %v1067_v39 = vadd.f32 %v3510_v33, %v1066_v5 }
 0x21f   :  { %v1069_v7 = vpop.f32.mrb[10].mxu1 }
 0x220   :  { %v1071_v8 = vpop.f32.mrb[11].mxu1  ;;  %v1070_v46 = vadd.f32 %v3510_v33, %v1069_v7 }
 0x225   :  { %v1074_v9 = vpop.f32.mrb[12].mxu1 }
 0x226   :  { %v1076_v10 = vpop.f32.mrb[13].mxu1  ;;  %v1075_v36 = vadd.f32 %v3510_v33, %v1074_v9 }
 0x227   :  { %v1077_v11 = vpop.f32.mrb[14].mxu1 }
 0x228   :  { %v1079_v12 = vpop.f32.mrb[15].mxu1  ;;  %v1078_v44 = vadd.f32 %v3510_v33, %v1077_v11 }
 0x22d   :  { %v1082_v14 = vpop.f32.mrb[16].mxu1 }
 0x22e   :  { %v2732_v16 = vpop.f32.mrb[48].mxu0  ;;  %v1084_v17 = vpop.f32.mrb[17].mxu1  ;;  %v1083_v61 = vadd.f32 %v3510_v33, %v1082_v14 }
 0x22f   :  { %v1284_v19 = vadd.f32 %v2732_v16, %v1059_v13  ;;  %v1275_v20 = vpop.f32.mrb[49].mxu0  ;;  %v1085_v21 = vpop.f32.mrb[18].mxu1 }
 0x230   :  { %v1276_v23 = vadd.f32 %v1275_v20, %v1051_v15  ;;  %v2733_v24 = vpop.f32.mrb[50].mxu0  ;;  %v1087_v25 = vpop.f32.mrb[19].mxu1  ;;  %v1086_v4 = vadd.f32 %v3510_v33, %v1085_v21 }
 0x231   :  { %v1287_v26 = vadd.f32 %v2733_v24, %v1062_v18  ;;  %v1278_v27 = vpop.f32.mrb[51].mxu0  ;;  %v1468_v29 = vmax.f32 %v1284_v19, 0.0 }
 0x232   :  { %v1279_v28 = vadd.f32 %v1278_v27, %v1054_v22  ;;  %v1466_v31 = vmax.f32 %v1276_v23, 0.0 }
 0x233   :  { %v1469_v30 = vmax.f32 %v1287_v26, 0.0 }
 0x234   :  { %v1467_v34 = vmax.f32 %v1279_v28, 0.0 }
 0x235   :  { %v1515_v35 = vpack.c.bf16 %v1469_v30, %v1468_v29  ;;  %v1090_v37 = vpop.f32.mrb[20].mxu1 }
 0x236   :  { %v1514_v38 = vpack.c.bf16 %v1467_v34, %v1466_v31  ;;  %v2736_v40 = vpop.f32.mrb[52].mxu0  ;;  %v1092_v41 = vpop.f32.mrb[21].mxu1  ;;  %v1091_v58 = vadd.f32 %v3510_v33, %v1090_v37 }
 0x237   :  { %v1300_v42 = vadd.f32 %v2736_v40, %v1075_v36  ;;  %v1291_v43 = vpop.f32.mrb[53].mxu0  ;;  %v1093_v45 = vpop.f32.mrb[22].mxu1 }
 0x238   :  { %2794 = vmatprep.mubr.bf16.mxu0 %v1514_v38  ;;  %v1292_v47 = vadd.f32 %v1291_v43, %v1067_v39  ;;  %v2737_v48 = vpop.f32.mrb[54].mxu0  ;;  %v1095_v49 = vpop.f32.mrb[23].mxu1  ;;  %v1094_v2 = vadd.f32 %v3510_v33, %v1093_v45 }
 0x239   :  { %2795 = vmatmul.mubr.bf16.vlgmr.msra.gmra.mrb[96].mxu0 %v1515_v35  ;;  %v1303_v50 = vadd.f32 %v2737_v48, %v1078_v44  ;;  %v1294_v51 = vpop.f32.mrb[55].mxu0  ;;  %v1472_v53 = vmax.f32 %v1300_v42, 0.0 }
 0x23a   :  { %v1295_v52 = vadd.f32 %v1294_v51, %v1070_v46  ;;  %v1470_v55 = vmax.f32 %v1292_v47, 0.0 }
 0x23b   :  { %v1473_v54 = vmax.f32 %v1303_v50, 0.0 }
 0x23c   :  { %v1471_v56 = vmax.f32 %v1295_v52, 0.0 }
 0x23d   :  { %v1517_v57 = vpack.c.bf16 %v1473_v54, %v1472_v53  ;;  %v1098_v59 = vpop.f32.mrb[24].mxu1 }
 0x23e   :  { %v1516_v60 = vpack.c.bf16 %v1471_v56, %v1470_v55  ;;  %v2740_v62 = vpop.f32.mrb[56].mxu0  ;;  %v1100_v63 = vpop.f32.mrb[25].mxu1  ;;  %v1099_v18 = vadd.f32 %v3510_v33, %v1098_v59 }
 0x23f   :  { %v1316_v0 = vadd.f32 %v2740_v62, %v1091_v58  ;;  %v1307_v1 = vpop.f32.mrb[57].mxu0  ;;  %v1101_v3 = vpop.f32.mrb[26].mxu1 }
 0x240   :  { %2798 = vmatprep.mubr.bf16.mxu0 %v1516_v60  ;;  %v1308_v5 = vadd.f32 %v1307_v1, %v1083_v61  ;;  %v2741_v6 = vpop.f32.mrb[58].mxu0  ;;  %v1103_v7 = vpop.f32.mrb[27].mxu1  ;;  %v1102_v24 = vadd.f32 %v3510_v33, %v1101_v3 }
 0x241   :  { %2799 = vmatmul.mubr.bf16.gmra.mrb[100].mxu0 %v1517_v57  ;;  %v1319_v8 = vadd.f32 %v2741_v6, %v1094_v2  ;;  %v1310_v9 = vpop.f32.mrb[59].mxu0  ;;  %v1476_v11 = vmax.f32 %v1316_v0, 0.0 }
 0x242   :  { %v1311_v10 = vadd.f32 %v1310_v9, %v1086_v4  ;;  %v1474_v13 = vmax.f32 %v1308_v5, 0.0 }
 0x243   :  { %v1477_v12 = vmax.f32 %v1319_v8, 0.0 }
 0x244   :  { %v1475_v14 = vmax.f32 %v1311_v10, 0.0 }
 0x245   :  { %v1519_v15 = vpack.c.bf16 %v1477_v12, %v1476_v11  ;;  %v1106_v16 = vpop.f32.mrb[28].mxu1 }
 0x246   :  { %v1518_v17 = vpack.c.bf16 %v1475_v14, %v1474_v13  ;;  %v1107_v19 = vadd.f32 %v3510_v33, %v1106_v16  ;;  %v2744_v20 = vpop.f32.mrb[60].mxu0  ;;  %v1108_v21 = vpop.f32.mrb[29].mxu1 }
 0x247   :  { %v1323_v22 = vpop.f32.mrb[61].mxu0  ;;  %v1109_v23 = vpop.f32.mrb[30].mxu1 }
 0x248   :  { %2802 = vmatprep.mubr.bf16.mxu0 %v1518_v17  ;;  %v1332_v25 = vadd.f32 %v2744_v20, %v1107_v19  ;;  %v1324_v26 = vadd.f32 %v1323_v22, %v1099_v18  ;;  %v1110_v27 = vadd.f32 %v3510_v33, %v1109_v23  ;;  %v2745_v28 = vpop.f32.mrb[62].mxu0  ;;  %v1111_v29 = vpop.f32.mrb[31].mxu1 }
 0x249   :  { %2803 = vmatmul.mubr.bf16.gmra.mrb[104].mxu0 %v1519_v15  ;;  %v1326_v30 = vpop.f32.mrb[63].mxu0 }
 0x24a   :  { %v1335_v31 = vadd.f32 %v2745_v28, %v1110_v27  ;;  %v1327_v34 = vadd.f32 %v1326_v30, %v1102_v24  ;;  %v1480_v35 = vmax.f32 %v1332_v25, 0.0  ;;  %v1478_v36 = vmax.f32 %v1324_v26, 0.0 }
 0x24c   :  { %v1481_v37 = vmax.f32 %v1335_v31, 0.0  ;;  %v1479_v38 = vmax.f32 %v1327_v34, 0.0 }
 0x24d   :  { %v1114_v39 = vpop.f32.mrb[32].mxu1 }
 0x24e   :  { %v1521_v40 = vpack.c.bf16 %v1481_v37, %v1480_v35  ;;  %v1520_v41 = vpack.c.bf16 %v1479_v38, %v1478_v36  ;;  %v1115_v42 = vadd.f32 %v3510_v33, %v1114_v39  ;;  %v1116_v43 = vpop.f32.mrb[33].mxu1  ;;  %v2748_v44 = vpop.f32.mrb[64].mxu0 }
 0x24f   :  { %v1117_v45 = vpop.f32.mrb[34].mxu1  ;;  %v1339_v46 = vpop.f32.mrb[65].mxu0 }
 0x250   :  { %2806 = vmatprep.mubr.bf16.mxu0 %v1520_v41  ;;  %v1118_v47 = vadd.f32 %v3510_v33, %v1117_v45  ;;  %v1119_v48 = vpop.f32.mrb[35].mxu1  ;;  %v1340_v49 = vadd.f32 %v1339_v46, %v1115_v42  ;;  %v2749_v50 = vpop.f32.mrb[66].mxu0 }
 0x251   :  { %2807 = vmatmul.mubr.bf16.gmra.mrb[108].mxu0 %v1521_v40  ;;  %v1342_v51 = vpop.f32.mrb[67].mxu0 }
 0x252   :  { %v1343_v52 = vadd.f32 %v1342_v51, %v1118_v47  ;;  %v1482_v53 = vmax.f32 %v1340_v49, 0.0 }
 0x254   :  { %v1483_v54 = vmax.f32 %v1343_v52, 0.0 }
 0x255   :  { %v1122_v55 = vpop.f32.mrb[36].mxu1 }
 0x256   :  { %v1123_v56 = vadd.f32 %v3510_v33, %v1122_v55  ;;  %v1124_v57 = vpop.f32.mrb[37].mxu1  ;;  %v1522_v58 = vpack.c.bf16 %v1483_v54, %v1482_v53  ;;  %v2752_v59 = vpop.f32.mrb[68].mxu0 }
 0x257   :  { %v1125_v60 = vpop.f32.mrb[38].mxu1  ;;  %v1355_v61 = vpop.f32.mrb[69].mxu0 }
 0x258   :  { %v1348_v62 = vadd.f32 %v2748_v44, %v1123_v56  ;;  %v1126_v63 = vadd.f32 %v3510_v33, %v1125_v60  ;;  %2810 = vmatprep.mubr.bf16.mxu0 %v1522_v58  ;;  %v1127_v0 = vpop.f32.mrb[39].mxu1  ;;  %v2753_v1 = vpop.f32.mrb[70].mxu0 }
 0x259   :  { %v1358_v2 = vpop.f32.mrb[71].mxu0 }
 0x25a   :  { %v1351_v3 = vadd.f32 %v2749_v50, %v1126_v63  ;;  %v1484_v4 = vmax.f32 %v1348_v62, 0.0 }
 0x25c   :  { %v1485_v5 = vmax.f32 %v1351_v3, 0.0 }
 0x25d   :  { %v1130_v6 = vpop.f32.mrb[40].mxu1 }
 0x25e   :  { %v1523_v7 = vpack.c.bf16 %v1485_v5, %v1484_v4  ;;  %v1131_v8 = vadd.f32 %v3510_v33, %v1130_v6  ;;  %v1132_v9 = vpop.f32.mrb[41].mxu1  ;;  %v2756_v10 = vpop.f32.mrb[72].mxu0 }
 0x25f   :  { %v1133_v11 = vpop.f32.mrb[42].mxu1  ;;  %v1371_v12 = vpop.f32.mrb[73].mxu0 }
 0x260   :  { %2811 = vmatmul.mubr.bf16.gmra.mrb[112].mxu0 %v1523_v7  ;;  %v1134_v13 = vadd.f32 %v3510_v33, %v1133_v11  ;;  %v1135_v14 = vpop.f32.mrb[43].mxu1  ;;  %v1356_v15 = vadd.f32 %v1355_v61, %v1131_v8  ;;  %v2757_v16 = vpop.f32.mrb[74].mxu0 }
 0x261   :  { %v1374_v17 = vpop.f32.mrb[75].mxu0 }
 0x262   :  { %v1359_v18 = vadd.f32 %v1358_v2, %v1134_v13  ;;  %v1486_v19 = vmax.f32 %v1356_v15, 0.0 }
 0x264   :  { %v1487_v20 = vmax.f32 %v1359_v18, 0.0 }
 0x265   :  { %v1138_v21 = vpop.f32.mrb[44].mxu1 }
 0x266   :  { %v1139_v22 = vadd.f32 %v3510_v33, %v1138_v21  ;;  %v1140_v23 = vpop.f32.mrb[45].mxu1  ;;  %v1524_v24 = vpack.c.bf16 %v1487_v20, %v1486_v19  ;;  %v3535_v25 = vpop.f32.mrb[76].mxu0 }
 0x267   :  { %v1141_v26 = vpop.f32.mrb[46].mxu1  ;;  %v1387_v27 = vpop.f32.mrb[77].mxu0 }
 0x268   :  { %v1364_v28 = vadd.f32 %v2752_v59, %v1139_v22  ;;  %v1142_v29 = vadd.f32 %v3510_v33, %v1141_v26  ;;  %2814 = vmatprep.mubr.bf16.mxu0 %v1524_v24  ;;  %v1143_v30 = vpop.f32.mrb[47].mxu1  ;;  %v3538_v31 = vpop.f32.mrb[78].mxu0 }
 0x269   :  { %v1390_v34 = vpop.f32.mrb[79].mxu0 }
 0x26a   :  { %v1367_v35 = vadd.f32 %v2753_v1, %v1142_v29  ;;  %v1488_v36 = vmax.f32 %v1364_v28, 0.0 }
 0x26c   :  { %v1489_v37 = vmax.f32 %v1367_v35, 0.0 }
 0x26d   :  { %v1146_v38 = vpop.f32.mrb[48].mxu1 }
 0x26e   :  { %v1525_v39 = vpack.c.bf16 %v1489_v37, %v1488_v36  ;;  %v1147_v40 = vadd.f32 %v3510_v33, %v1146_v38  ;;  %v1148_v41 = vpop.f32.mrb[49].mxu1  ;;  %v3541_v42 = vpop.f32.mrb[80].mxu0 }
 0x26f   :  { %v1149_v43 = vpop.f32.mrb[50].mxu1  ;;  %v3543_v44 = vpop.f32.mrb[81].mxu0 }
 0x270   :  { %2815 = vmatmul.mubr.bf16.gmra.mrb[116].mxu0 %v1525_v39  ;;  %v1150_v45 = vadd.f32 %v3510_v33, %v1149_v43  ;;  %v1151_v46 = vpop.f32.mrb[51].mxu1  ;;  %v1372_v47 = vadd.f32 %v1371_v12, %v1147_v40  ;;  %v3546_v48 = vpop.f32.mrb[82].mxu0 }
 0x271   :  { %v1406_v49 = vpop.f32.mrb[83].mxu0 }
 0x272   :  { %v1375_v50 = vadd.f32 %v1374_v17, %v1150_v45  ;;  %v1490_v51 = vmax.f32 %v1372_v47, 0.0 }
 0x274   :  { %v1491_v52 = vmax.f32 %v1375_v50, 0.0 }
 0x275   :  { %v1154_v53 = vpop.f32.mrb[52].mxu1 }
 0x276   :  { %v1155_v54 = vadd.f32 %v3510_v33, %v1154_v53  ;;  %v1156_v55 = vpop.f32.mrb[53].mxu1  ;;  %v1526_v56 = vpack.c.bf16 %v1491_v52, %v1490_v51  ;;  %v3549_v57 = vpop.f32.mrb[84].mxu0 }
 0x277   :  { %v1157_v58 = vpop.f32.mrb[54].mxu1  ;;  %v3551_v59 = vpop.f32.mrb[85].mxu0 }
 0x278   :  { %v1380_v60 = vadd.f32 %v2756_v10, %v1155_v54  ;;  %v1158_v61 = vadd.f32 %v3510_v33, %v1157_v58  ;;  %2818 = vmatprep.mubr.bf16.mxu0 %v1526_v56  ;;  %v1159_v62 = vpop.f32.mrb[55].mxu1  ;;  %v3554_v63 = vpop.f32.mrb[86].mxu0 }
 0x279   :  { %v3556_v0 = vpop.f32.mrb[87].mxu0 }
 0x27a   :  { %v1383_v1 = vadd.f32 %v2757_v16, %v1158_v61  ;;  %v1492_v2 = vmax.f32 %v1380_v60, 0.0 }
 0x27c   :  { %v1493_v3 = vmax.f32 %v1383_v1, 0.0 }
 0x27d   :  { %v1162_v4 = vpop.f32.mrb[56].mxu1 }
 0x27e   :  { %v1527_v5 = vpack.c.bf16 %v1493_v3, %v1492_v2  ;;  %v1163_v6 = vadd.f32 %v3510_v33, %v1162_v4  ;;  %v1164_v7 = vpop.f32.mrb[57].mxu1  ;;  %v3559_v8 = vpop.f32.mrb[88].mxu0 }
 0x27f   :  { %v1165_v9 = vpop.f32.mrb[58].mxu1  ;;  %v3561_v10 = vpop.f32.mrb[89].mxu0 }
 0x280   :  { %2819 = vmatmul.mubr.bf16.gmra.mrb[120].mxu0 %v1527_v5  ;;  %v1166_v11 = vadd.f32 %v3510_v33, %v1165_v9  ;;  %v1167_v12 = vpop.f32.mrb[59].mxu1  ;;  %v1388_v13 = vadd.f32 %v1387_v27, %v1163_v6  ;;  %v3564_v14 = vpop.f32.mrb[90].mxu0 }
 0x281   :  { %v3566_v15 = vpop.f32.mrb[91].mxu0 }
 0x282   :  { %v1391_v16 = vadd.f32 %v1390_v34, %v1166_v11  ;;  %v1494_v17 = vmax.f32 %v1388_v13, 0.0 }
 0x284   :  { %v1495_v18 = vmax.f32 %v1391_v16, 0.0 }
 0x285   :  { %v1170_v19 = vpop.f32.mrb[60].mxu1 }
 0x286   :  { %v1171_v20 = vadd.f32 %v3510_v33, %v1170_v19  ;;  %v1172_v21 = vpop.f32.mrb[61].mxu1  ;;  %v1528_v22 = vpack.c.bf16 %v1495_v18, %v1494_v17  ;;  %v3569_v23 = vpop.f32.mrb[92].mxu0 }
 0x287   :  { %v1173_v24 = vpop.f32.mrb[62].mxu1  ;;  %v3571_v26 = vpop.f32.mrb[93].mxu0 }
 0x288   :  { %v1396_v28 = vadd.f32 %v3535_v25, %v1171_v20  ;;  %v1174_v27 = vadd.f32 %v3510_v33, %v1173_v24  ;;  %v1175_v29 = vpop.f32.mrb[63].mxu1  ;;  %2822 = vmatprep.mubr.bf16.mxu0 %v1528_v22  ;;  %v3575_v30 = vpop.f32.mrb[94].mxu0 }
 0x289   :  { %v3577_v34 = vpop.f32.mrb[95].mxu0 }
 0x28a   :  { %v1399_v35 = vadd.f32 %v3538_v31, %v1174_v27  ;;  %v1496_v36 = vmax.f32 %v1396_v28, 0.0 }
 0x28c   :  { %v1497_v37 = vmax.f32 %v1399_v35, 0.0 }
 0x28d   :  { %v1178_v38 = vpop.f32.mrb[64].mxu1 }
 0x28e   :  { %v1529_v39 = vpack.c.bf16 %v1497_v37, %v1496_v36  ;;  %v1179_v40 = vadd.f32 %v3510_v33, %v1178_v38  ;;  %v1180_v41 = vpop.f32.mrb[65].mxu1 }
 0x28f   :  { %v1181_v43 = vpop.f32.mrb[66].mxu1 }
 0x290   :  { %v1182_v25 = vadd.f32 %v3510_v33, %v1181_v43  ;;  %v1183_v45 = vpop.f32.mrb[67].mxu1  ;;  %v1404_v46 = vadd.f32 %v3543_v44, %v1179_v40  ;;  %2823 = vmatmul.mubr.bf16.gmra.mrb[124].mxu0 %v1529_v39 }
 0x292   :  { %v1498_v47 = vmax.f32 %v1404_v46, 0.0  ;;  %v1407_v50 = vadd.f32 %v1406_v49, %v1182_v25 }
 0x294   :  { %v1499_v51 = vmax.f32 %v1407_v50, 0.0 }
 0x295   :  { %v1186_v52 = vpop.f32.mrb[68].mxu1 }
 0x296   :  { %v1187_v31 = vadd.f32 %v3510_v33, %v1186_v52  ;;  %v1188_v53 = vpop.f32.mrb[69].mxu1  ;;  %v1530_v54 = vpack.c.bf16 %v1499_v51, %v1498_v47 }
 0x297   :  { %v1189_v55 = vpop.f32.mrb[70].mxu1 }
 0x298   :  { %v1412_v56 = vadd.f32 %v3541_v42, %v1187_v31  ;;  %v1190_v58 = vadd.f32 %v3510_v33, %v1189_v55  ;;  %v1191_v60 = vpop.f32.mrb[71].mxu1  ;;  %2826 = vmatprep.mubr.bf16.mxu0 %v1530_v54 }
 0x29a   :  { %v1500_v61 = vmax.f32 %v1412_v56, 0.0  ;;  %v1415_v62 = vadd.f32 %v3546_v48, %v1190_v58 }
 0x29c   :  { %v1501_v44 = vmax.f32 %v1415_v62, 0.0 }
 0x29d   :  { %v1194_v1 = vpop.f32.mrb[72].mxu1 }
 0x29e   :  { %v1531_v2 = vpack.c.bf16 %v1501_v44, %v1500_v61  ;;  %v1195_v49 = vadd.f32 %v3510_v33, %v1194_v1  ;;  %v1196_v3 = vpop.f32.mrb[73].mxu1 }
 0x29f   :  { %v1197_v4 = vpop.f32.mrb[74].mxu1 }
 0x2a0   :  { %v1198_v5 = vadd.f32 %v3510_v33, %v1197_v4  ;;  %v1199_v6 = vpop.f32.mrb[75].mxu1  ;;  %v1420_v7 = vadd.f32 %v3551_v59, %v1195_v49  ;;  %2827 = vmatmul.mubr.bf16.gmra.mrb[128].mxu0 %v1531_v2 }
 0x2a2   :  { %v1502_v42 = vmax.f32 %v1420_v7, 0.0  ;;  %v1423_v9 = vadd.f32 %v3556_v0, %v1198_v5 }
 0x2a4   :  { %v1503_v11 = vmax.f32 %v1423_v9, 0.0 }
 0x2a5   :  { %v1202_v12 = vpop.f32.mrb[76].mxu1 }
 0x2a6   :  { %v1203_v48 = vadd.f32 %v3510_v33, %v1202_v12  ;;  %v1204_v13 = vpop.f32.mrb[77].mxu1  ;;  %v1532_v16 = vpack.c.bf16 %v1503_v11, %v1502_v42 }
 0x2a7   :  { %v1205_v17 = vpop.f32.mrb[78].mxu1 }
 0x2a8   :  { %v1428_v18 = vadd.f32 %v3549_v57, %v1203_v48  ;;  %v1206_v19 = vadd.f32 %v3510_v33, %v1205_v17  ;;  %v1207_v20 = vpop.f32.mrb[79].mxu1  ;;  %2830 = vmatprep.mubr.bf16.mxu0 %v1532_v16 }
 0x2aa   :  { %v1504_v21 = vmax.f32 %v1428_v18, 0.0  ;;  %v1431_v59 = vadd.f32 %v3554_v63, %v1206_v19 }
 0x2ac   :  { %v1505_v22 = vmax.f32 %v1431_v59, 0.0 }
 0x2ad   :  { %v1210_v24 = vpop.f32.mrb[80].mxu1 }
 0x2ae   :  { %v1533_v28 = vpack.c.bf16 %v1505_v22, %v1504_v21  ;;  %v1211_v0 = vadd.f32 %v3510_v33, %v1210_v24  ;;  %v1212_v27 = vpop.f32.mrb[81].mxu1 }
 0x2af   :  { %v1213_v29 = vpop.f32.mrb[82].mxu1 }
 0x2b0   :  { %v1214_v35 = vadd.f32 %v3510_v33, %v1213_v29  ;;  %v1215_v36 = vpop.f32.mrb[83].mxu1  ;;  %v1436_v37 = vadd.f32 %v3561_v10, %v1211_v0  ;;  %2831 = vmatmul.mubr.bf16.gmra.mrb[132].mxu0 %v1533_v28 }
 0x2b2   :  { %v1506_v57 = vmax.f32 %v1436_v37, 0.0  ;;  %v1439_v38 = vadd.f32 %v3566_v15, %v1214_v35 }
 0x2b4   :  { %v1507_v39 = vmax.f32 %v1439_v38, 0.0 }
 0x2b5   :  { %v1218_v40 = vpop.f32.mrb[84].mxu1 }
 0x2b6   :  { %v1219_v63 = vadd.f32 %v3510_v33, %v1218_v40  ;;  %v1220_v41 = vpop.f32.mrb[85].mxu1  ;;  %v1534_v43 = vpack.c.bf16 %v1507_v39, %v1506_v57 }
 0x2b7   :  { %v1221_v25 = vpop.f32.mrb[86].mxu1 }
 0x2b8   :  { %v1444_v45 = vadd.f32 %v3559_v8, %v1219_v63  ;;  %v1222_v46 = vadd.f32 %v3510_v33, %v1221_v25  ;;  %v1223_v47 = vpop.f32.mrb[87].mxu1  ;;  %2834 = vmatprep.mubr.bf16.mxu0 %v1534_v43 }
 0x2ba   :  { %v1508_v50 = vmax.f32 %v1444_v45, 0.0  ;;  %v1447_v10 = vadd.f32 %v3564_v14, %v1222_v46 }
 0x2bc   :  { %v1509_v51 = vmax.f32 %v1447_v10, 0.0 }
 0x2bd   :  { %v1226_v52 = vpop.f32.mrb[88].mxu1 }
 0x2be   :  { %v1535_v31 = vpack.c.bf16 %v1509_v51, %v1508_v50  ;;  %v1227_v15 = vadd.f32 %v3510_v33, %v1226_v52  ;;  %v1228_v53 = vpop.f32.mrb[89].mxu1 }
 0x2bf   :  { %v1229_v54 = vpop.f32.mrb[90].mxu1 }
 0x2c0   :  { %v1230_v55 = vadd.f32 %v3510_v33, %v1229_v54  ;;  %v1231_v56 = vpop.f32.mrb[91].mxu1  ;;  %v1452_v58 = vadd.f32 %v3571_v26, %v1227_v15  ;;  %2835 = vmatmul.mubr.bf16.gmra.mrb[136].mxu0 %v1535_v31 }
 0x2c2   :  { %v1510_v8 = vmax.f32 %v1452_v58, 0.0  ;;  %v1455_v60 = vadd.f32 %v3577_v34, %v1230_v55  ;;  %v3043_v34 = vld [vmem:[%s4077_s0 + $0x8] ss:$12 sps:$4 sm:$0xff]  }
 0x2c4   :  { %v1511_v61 = vmax.f32 %v1455_v60, 0.0  ;;  %v3044_v60 = vld [vmem:[%s4077_s0] ss:$12 sps:$4 sm:$0xff]  }
 0x2c5   :  { %v1234_v62 = vpop.f32.mrb[92].mxu1 }
 0x2c6   :  { %v1235_v14 = vadd.f32 %v3510_v33, %v1234_v62  ;;  %v1236_v44 = vpop.f32.mrb[93].mxu1  ;;  %v1536_v1 = vpack.c.bf16 %v1511_v61, %v1510_v8  ;;  %v3045_v61 = vld [vmem:[%s4077_s0 + $0x1c] ss:$12 sps:$4 sm:$0xff]  }
 0x2c7   :  { %v1237_v2 = vpop.f32.mrb[94].mxu1 }
 0x2c8   :  { %v1460_v49 = vadd.f32 %v3569_v23, %v1235_v14  ;;  %v1238_v3 = vadd.f32 %v3510_v33, %v1237_v2  ;;  %2838 = vmatprep.mubr.bf16.mxu0 %v1536_v1  ;;  %v1239_v4 = vpop.f32.mrb[95].mxu1 }
 0x2c9   :  { %v3048_v4 = vld [vmem:[%s4077_s0 + $0x30] ss:$12 sps:$4 sm:$0xff]  }
 0x2ca   :  { %v1512_v5 = vmax.f32 %v1460_v49, 0.0  ;;  %v1463_v26 = vadd.f32 %v3575_v30, %v1238_v3  ;;  %v3047_v3 = vld [vmem:[%s4077_s0 + $0x34] ss:$12 sps:$4 sm:$0xff]  }
 0x2cc   :  { %v1513_v6 = vmax.f32 %v1463_v26, 0.0 }
 0x2ce   :  { %v1537_v7 = vpack.c.bf16 %v1513_v6, %v1512_v5  ;;  %v3049_v5 = vld [vmem:[%s4077_s0 + $0x4c] ss:$12 sps:$4 sm:$0xff]  }
 0x2d0   :  { %2839 = vmatmul.mubr.bf16.gmra.mrb[140].mxu0 %v1537_v7 }
 0x2d1   :  { %2858 = vmatprep.mubr.bf16.mxu0 %v3043_v34 }
 0x30c   :  { %v2796_v42 = vpop.f32.mrb[96].mxu0 }
 0x30d   :  { %v1636_v9 = vpop.f32.mrb[97].mxu0 }
 0x30e   :  { %v2797_v11 = vpop.f32.mrb[98].mxu0 }
 0x30f   :  { %v1828_v12 = vpack.c.bf16 %v2797_v11, %v2796_v42  ;;  %v1639_v23 = vpop.f32.mrb[99].mxu0  ;;  %v3050_v11 = vld [vmem:[%s4077_s0 + $0x48] ss:$12 sps:$4 sm:$0xff]  }
 0x310   :  { %v1827_v48 = vpack.c.bf16 %v1639_v23, %v1636_v9  ;;  %v3052_v23 = vld [vmem:[%s4077_s0 + $0x60] ss:$12 sps:$4 sm:$0xff]  }
 0x312   :  { %1859 = vmatpush1.bf16.msra.mxu1 %v1827_v48  ;;  %v3053_v48 = vld [vmem:[%s4077_s0 + $0x7c] ss:$12 sps:$4 sm:$0xff]  }
 0x313   :  { %1860 = vmatprep.subr.bf16.mxu1 %v3114_v32 }
 0x314   :  { %v2800_v33 = vpop.f32.mrb[100].mxu0 }
 0x315   :  { %v1652_v13 = vpop.f32.mrb[101].mxu0 }
 0x316   :  { %1861 = vmatpush1.bf16.msra.mxu1 %v1828_v12  ;;  %v2801_v30 = vpop.f32.mrb[102].mxu0  ;;  %v3051_v12 = vld [vmem:[%s4077_s0 + $0x64] ss:$12 sps:$4 sm:$0xff]  }
 0x317   :  { %v1830_v16 = vpack.c.bf16 %v2801_v30, %v2800_v33  ;;  %v1655_v17 = vpop.f32.mrb[103].mxu0  ;;  %1862 = vmatprep.subr.bf16.mxu1 %v3114_v32 }
 0x318   :  { %v1829_v18 = vpack.c.bf16 %v1655_v17, %v1652_v13 }
 0x31a   :  { %1863 = vmatpush1.bf16.msra.mxu1 %v1829_v18 }
 0x31b   :  { %1864 = vmatprep.subr.bf16.mxu1 %v3114_v32 }
 0x31c   :  { %v2804_v19 = vpop.f32.mrb[104].mxu0 }
 0x31d   :  { %v1668_v20 = vpop.f32.mrb[105].mxu0 }
 0x31e   :  { %1865 = vmatpush1.bf16.msra.mxu1 %v1830_v16  ;;  %v2805_v21 = vpop.f32.mrb[106].mxu0 }
 0x31f   :  { %v1832_v59 = vpack.c.bf16 %v2805_v21, %v2804_v19  ;;  %v1671_v22 = vpop.f32.mrb[107].mxu0  ;;  %1866 = vmatprep.subr.bf16.mxu1 %v3114_v32  ;;  %v3054_v19 = vld [vmem:[%s4077_s0 + $0x78] ss:$12 sps:$4 sm:$0xff]   ;;  %v3056_v21 = vld [vmem:[%s4077_s0 + $0x90] ss:$12 sps:$4 sm:$0xff]  }
 0x320   :  { %v1831_v24 = vpack.c.bf16 %v1671_v22, %v1668_v20  ;;  %v3055_v20 = vld [vmem:[%s4077_s0 + $0x94] ss:$12 sps:$4 sm:$0xff]  }
 0x322   :  { %1867 = vmatpush1.bf16.msra.mxu1 %v1831_v24 }
 0x323   :  { %1868 = vmatprep.subr.bf16.mxu1 %v3114_v32 }
 0x324   :  { %v2808_v28 = vpop.f32.mrb[108].mxu0 }
 0x325   :  { %v1684_v0 = vpop.f32.mrb[109].mxu0 }
 0x326   :  { %1869 = vmatpush1.bf16.msra.mxu1 %v1832_v59  ;;  %v2809_v27 = vpop.f32.mrb[110].mxu0  ;;  %v3057_v59 = vld [vmem:[%s4077_s0 + $0xac] ss:$12 sps:$4 sm:$0xff]  }
 0x327   :  { %v1834_v29 = vpack.c.bf16 %v2809_v27, %v2808_v28  ;;  %v1687_v35 = vpop.f32.mrb[111].mxu0  ;;  %1870 = vmatprep.subr.bf16.mxu1 %v3114_v32 }
 0x328   :  { %v1833_v36 = vpack.c.bf16 %v1687_v35, %v1684_v0  ;;  %v3058_v35 = vld [vmem:[%s4077_s0 + $0xa8] ss:$12 sps:$4 sm:$0xff]  }
 0x32a   :  { %1871 = vmatpush1.bf16.msra.mxu1 %v1833_v36  ;;  %v3059_v36 = vld [vmem:[%s4077_s0 + $0xc4] ss:$12 sps:$4 sm:$0xff]  }
 0x32b   :  { %1872 = vmatprep.subr.bf16.mxu1 %v3114_v32 }
 0x32e   :  { %1873 = vmatpush1.bf16.msra.mxu1 %v1834_v29 }
 0x32f   :  { %1874 = vmatprep.subr.bf16.mxu1 %v3114_v32 }
 0x333   :  { %v2812_v37 = vpop.f32.mrb[112].mxu0 }
 0x334   :  { %v1700_v57 = vpop.f32.mrb[113].mxu0 }
 0x335   :  { %v2813_v38 = vpop.f32.mrb[114].mxu0 }
 0x336   :  { %v1836_v39 = vpack.c.bf16 %v2813_v38, %v2812_v37  ;;  %v1703_v40 = vpop.f32.mrb[115].mxu0  ;;  %v3060_v37 = vld [vmem:[%s4077_s0 + $0xc0] ss:$12 sps:$4 sm:$0xff]   ;;  %v3062_v38 = vld [vmem:[%s4077_s0 + $0xdc] ss:$12 sps:$4 sm:$0xff]  }
 0x337   :  { %v1835_v63 = vpack.c.bf16 %v1703_v40, %v1700_v57  ;;  %v3061_v57 = vld [vmem:[%s4077_s0 + $0x20] ss:$12 sps:$4 sm:$0xff]   ;;  %v3064_v40 = vld [vmem:[%s4077_s0 + $0xd8] ss:$12 sps:$4 sm:$0xff]  }
 0x339   :  { %1875 = vmatpush1.bf16.msra.mxu1 %v1835_v63  ;;  %v3065_v63 = vld [vmem:[%s4077_s0 + $0x50] ss:$12 sps:$4 sm:$0xff]  }
 0x33a   :  { %1876 = vmatprep.subr.bf16.mxu1 %v3114_v32 }
 0x33d   :  { %1877 = vmatpush1.bf16.msra.mxu1 %v1836_v39  ;;  %v3063_v39 = vld [vmem:[%s4077_s0 + $0x38] ss:$12 sps:$4 sm:$0xff]  }
 0x33e   :  { %1878 = vmatprep.subr.bf16.mxu1 %v3114_v32 }
 0x343   :  { %v2816_v41 = vpop.f32.mrb[116].mxu0 }
 0x344   :  { %v1716_v43 = vpop.f32.mrb[117].mxu0 }
 0x345   :  { %v2817_v25 = vpop.f32.mrb[118].mxu0 }
 0x346   :  { %v1838_v45 = vpack.c.bf16 %v2817_v25, %v2816_v41  ;;  %v1719_v46 = vpop.f32.mrb[119].mxu0  ;;  %v3066_v41 = vld [vmem:[%s4077_s0 + $0xf4] ss:$12 sps:$4 sm:$0xff]   ;;  %v3068_v25 = vld [vmem:[%s4077_s0 + $0xf0] ss:$12 sps:$4 sm:$0xff]  }
 0x347   :  { %v1837_v47 = vpack.c.bf16 %v1719_v46, %v1716_v43  ;;  %v3067_v43 = vld [vmem:[%s4077_s0 + $0x68] ss:$12 sps:$4 sm:$0xff]   ;;  %v3070_v46 = vld [vmem:[%s4077_s0 + $0x10c] ss:$12 sps:$4 sm:$0xff]  }
 0x349   :  { %1879 = vmatpush1.bf16.msra.mxu1 %v1837_v47  ;;  %v3071_v47 = vld [vmem:[%s4077_s0 + $0x98] ss:$12 sps:$4 sm:$0xff]  }
 0x34a   :  { %1880 = vmatprep.subr.bf16.mxu1 %v3114_v32 }
 0x34d   :  { %1881 = vmatpush1.bf16.msra.mxu1 %v1838_v45  ;;  %v3069_v45 = vld [vmem:[%s4077_s0 + $0x80] ss:$12 sps:$4 sm:$0xff]  }
 0x34e   :  { %1882 = vmatprep.subr.bf16.mxu1 %v3114_v32 }
 0x353   :  { %v2820_v50 = vpop.f32.mrb[120].mxu0 }
 0x354   :  { %v1732_v10 = vpop.f32.mrb[121].mxu0 }
 0x355   :  { %v2821_v51 = vpop.f32.mrb[122].mxu0 }
 0x356   :  { %v1840_v52 = vpack.c.bf16 %v2821_v51, %v2820_v50  ;;  %v1735_v31 = vpop.f32.mrb[123].mxu0  ;;  %v3072_v50 = vld [vmem:[%s4077_s0 + $0x108] ss:$12 sps:$4 sm:$0xff]   ;;  %v3074_v51 = vld [vmem:[%s4077_s0 + $0x124] ss:$12 sps:$4 sm:$0xff]  }
 0x357   :  { %v1839_v15 = vpack.c.bf16 %v1735_v31, %v1732_v10  ;;  %v3073_v10 = vld [vmem:[%s4077_s0 + $0xb0] ss:$12 sps:$4 sm:$0xff]   ;;  %v3076_v31 = vld [vmem:[%s4077_s0 + $0x120] ss:$12 sps:$4 sm:$0xff]  }
 0x359   :  { %1883 = vmatpush1.bf16.msra.mxu1 %v1839_v15  ;;  %v3077_v15 = vld [vmem:[%s4077_s0 + $0xe0] ss:$12 sps:$4 sm:$0xff]  }
 0x35a   :  { %1884 = vmatprep.subr.bf16.mxu1 %v3114_v32 }
 0x35d   :  { %1885 = vmatpush1.bf16.msra.mxu1 %v1840_v52  ;;  %v3075_v52 = vld [vmem:[%s4077_s0 + $0xc8] ss:$12 sps:$4 sm:$0xff]  }
 0x35e   :  { %1886 = vmatprep.subr.bf16.mxu1 %v3114_v32 }
 0x363   :  { %v2824_v53 = vpop.f32.mrb[124].mxu0 }
 0x364   :  { %v1748_v54 = vpop.f32.mrb[125].mxu0 }
 0x365   :  { %v2825_v55 = vpop.f32.mrb[126].mxu0 }
 0x366   :  { %v1842_v56 = vpack.c.bf16 %v2825_v55, %v2824_v53  ;;  %v1751_v58 = vpop.f32.mrb[127].mxu0  ;;  %v3078_v53 = vld [vmem:[%s4077_s0 + $0x13c] ss:$12 sps:$4 sm:$0xff]   ;;  %v3080_v55 = vld [vmem:[%s4077_s0 + $0x138] ss:$12 sps:$4 sm:$0xff]  }
 0x367   :  { %v1841_v8 = vpack.c.bf16 %v1751_v58, %v1748_v54  ;;  %v3079_v54 = vld [vmem:[%s4077_s0 + $0xf8] ss:$12 sps:$4 sm:$0xff]   ;;  %v3082_v58 = vld [vmem:[%s4077_s0 + $0x154] ss:$12 sps:$4 sm:$0xff]  }
 0x369   :  { %1887 = vmatpush1.bf16.msra.mxu1 %v1841_v8  ;;  %v3083_v8 = vld [vmem:[%s4077_s0 + $0x128] ss:$12 sps:$4 sm:$0xff]  }
 0x36a   :  { %1888 = vmatprep.subr.bf16.mxu1 %v3114_v32  ;;  %v3046_v32 = vld [vmem:[%s4077_s0 + $0x18] ss:$12 sps:$4 sm:$0xff]  }
 0x36d   :  { %1889 = vmatpush1.bf16.msra.mxu1 %v1842_v56  ;;  %v3081_v56 = vld [vmem:[%s4077_s0 + $0x110] ss:$12 sps:$4 sm:$0xff]  }
 0x370   :  { %1891 = vmatmul.mubr.bf16.vlgmr.msra.gmra.mrb[96].mxu1 %v3044_v60  ;;  %v3084_v60 = vld [vmem:[%s4077_s0 + $0x150] ss:$12 sps:$4 sm:$0xff]  }
 0x371   :  { %1898 = vmatprep.mubr.bf16.mxu1 %v3045_v61  ;;  %v3085_v61 = vld [vmem:[%s4077_s0 + $0x140] ss:$12 sps:$4 sm:$0xff]  }
 0x373   :  { %v2828_v62 = vpop.f32.mrb[128].mxu0 }
 0x374   :  { %v1764_v14 = vpop.f32.mrb[129].mxu0 }
 0x375   :  { %v2829_v44 = vpop.f32.mrb[130].mxu0 }
 0x376   :  { %v1844_v1 = vpack.c.bf16 %v2829_v44, %v2828_v62  ;;  %v1767_v2 = vpop.f32.mrb[131].mxu0  ;;  %v3086_v62 = vld [vmem:[%s4077_s0 + $0x16c] ss:$12 sps:$4 sm:$0xff]   ;;  %v3088_v44 = vld [vmem:[%s4077_s0 + $0x168] ss:$12 sps:$4 sm:$0xff]  }
 0x377   :  { %v1843_v49 = vpack.c.bf16 %v1767_v2, %v1764_v14  ;;  %v3087_v14 = vld [vmem:[%s4077_s0 + $0x158] ss:$12 sps:$4 sm:$0xff]  }
 0x378   :  { %1899 = vmatmul.mubr.bf16.gmra.mrb[100].mxu1 %v3046_v32  ;;  %v3090_v2 = vld [vmem:[%s4077_s0 + $0x184] ss:$12 sps:$4 sm:$0xff]   ;;  %v3092_v32 = vld [vmem:[%s4077_s0 + $0x180] ss:$12 sps:$4 sm:$0xff]  }
 0x379   :  { %2842 = vmatprep.subr.bf16.mxu0 %v1843_v49  ;;  %1906 = vmatprep.mubr.bf16.mxu1 %v3047_v3  ;;  %v3093_v3 = vld [vmem:[%s4077_s0 + $0x1a0] ss:$12 sps:$4 sm:$0xff]  }
 0x37a   :  { %2843 = vmatpush3.bf16.msra.mxu0 %v1843_v49  ;;  %v3091_v49 = vld [vmem:[%s4077_s0 + $0x188] ss:$12 sps:$4 sm:$0xff]  }
 0x37b   :  { %2844 = vmatprep.subr.bf16.mxu0 %v1844_v1 }
 0x37e   :  { %2845 = vmatpush3.bf16.msra.mxu0 %v1844_v1  ;;  %v3089_v1 = vld [vmem:[%s4077_s0 + $0x170] ss:$12 sps:$4 sm:$0xff]  }
 0x380   :  { %1907 = vmatmul.mubr.bf16.gmra.mrb[104].mxu1 %v3048_v4  ;;  %v3094_v4 = vld [vmem:[%s4077_s0 + $0x19c] ss:$12 sps:$4 sm:$0xff]  }
 0x381   :  { %1914 = vmatprep.mubr.bf16.mxu1 %v3049_v5  ;;  %v3095_v5 = vld [vmem:[%s4077_s0 + $0x1b8] ss:$12 sps:$4 sm:$0xff]  }
 0x383   :  { %v2832_v26 = vpop.f32.mrb[132].mxu0 }
 0x384   :  { %v1780_v6 = vpop.f32.mrb[133].mxu0 }
 0x385   :  { %v2833_v7 = vpop.f32.mrb[134].mxu0 }
 0x386   :  { %v1846_v34 = vpack.c.bf16 %v2833_v7, %v2832_v26  ;;  %v1783_v42 = vpop.f32.mrb[135].mxu0  ;;  %v3096_v26 = vld [vmem:[%s4077_s0 + $0x198] ss:$12 sps:$4 sm:$0xff]   ;;  %v3098_v7 = vld [vmem:[%s4077_s0 + $0x1d0] ss:$12 sps:$4 sm:$0xff]  }
 0x387   :  { %v1845_v9 = vpack.c.bf16 %v1783_v42, %v1780_v6  ;;  %v3097_v6 = vld [vmem:[%s4077_s0 + $0x1b4] ss:$12 sps:$4 sm:$0xff]   ;;  %v3100_v42 = vld [vmem:[%s4077_s0 + $0x1b0] ss:$12 sps:$4 sm:$0xff]  }
 0x388   :  { %1915 = vmatmul.mubr.bf16.gmra.mrb[108].mxu1 %v3050_v11  ;;  %v3102_v11 = vld [vmem:[%s4077_s0 + $0x200] ss:$12 sps:$4 sm:$0xff]  }
 0x389   :  { %2846 = vmatprep.subr.bf16.mxu0 %v1845_v9  ;;  %1922 = vmatprep.mubr.bf16.mxu1 %v3051_v12  ;;  %v3103_v12 = vld [vmem:[%s4077_s0 + $0x218] ss:$12 sps:$4 sm:$0xff]  }
 0x38a   :  { %2847 = vmatpush3.bf16.msra.mxu0 %v1845_v9  ;;  %v3101_v9 = vld [vmem:[%s4077_s0 + $0x1cc] ss:$12 sps:$4 sm:$0xff]  }
 0x38b   :  { %2848 = vmatprep.subr.bf16.mxu0 %v1846_v34 }
 0x38e   :  { %2849 = vmatpush3.bf16.msra.mxu0 %v1846_v34  ;;  %v3099_v34 = vld [vmem:[%s4077_s0 + $0x1e8] ss:$12 sps:$4 sm:$0xff]  }
 0x390   :  { %1923 = vmatmul.mubr.bf16.gmra.mrb[112].mxu1 %v3052_v23  ;;  %v3104_v23 = vld [vmem:[%s4077_s0 + $0x1c8] ss:$12 sps:$4 sm:$0xff]  }
 0x391   :  { %1930 = vmatprep.mubr.bf16.mxu1 %v3053_v48  ;;  %v3105_v48 = vld [vmem:[%s4077_s0 + $0x1e4] ss:$12 sps:$4 sm:$0xff]  }
 0x393   :  { %v2836_v33 = vpop.f32.mrb[136].mxu0 }
 0x394   :  { %v1796_v13 = vpop.f32.mrb[137].mxu0 }
 0x395   :  { %v2837_v30 = vpop.f32.mrb[138].mxu0 }
 0x396   :  { %v1848_v16 = vpack.c.bf16 %v2837_v30, %v2836_v33  ;;  %v1799_v17 = vpop.f32.mrb[139].mxu0  ;;  %v3106_v33 = vld [vmem:[%s4077_s0 + $0x230] ss:$12 sps:$4 sm:$0xff]  }
 0x397   :  { %v1847_v18 = vpack.c.bf16 %v1799_v17, %v1796_v13  ;;  %v3107_v13 = vld [vmem:[%s4077_s0 + $0x1e0] ss:$12 sps:$4 sm:$0xff]   ;;  %v3108_v30 = vld [vmem:[%s4077_s0 + $0x1fc] ss:$12 sps:$4 sm:$0xff]  }
 0x398   :  { %1931 = vmatmul.mubr.bf16.gmra.mrb[116].mxu1 %v3054_v19  ;;  %v3110_v17 = vld [vmem:[%s4077_s0 + $0x214] ss:$12 sps:$4 sm:$0xff]   ;;  %v3112_v19 = vld [vmem:[%s4077_s0 + $0x22c] ss:$12 sps:$4 sm:$0xff]  }
 0x399   :  { %2850 = vmatprep.subr.bf16.mxu0 %v1847_v18  ;;  %1938 = vmatprep.mubr.bf16.mxu1 %v3055_v20  ;;  %v3113_v20 = vld [vmem:[%s4077_s0 + $0x228] ss:$12 sps:$4 sm:$0xff]  }
 0x39a   :  { %2851 = vmatpush3.bf16.msra.mxu0 %v1847_v18  ;;  %v3111_v18 = vld [vmem:[%s4077_s0 + $0x210] ss:$12 sps:$4 sm:$0xff]  }
 0x39b   :  { %2852 = vmatprep.subr.bf16.mxu0 %v1848_v16 }
 0x39e   :  { %2853 = vmatpush3.bf16.msra.mxu0 %v1848_v16  ;;  %v3109_v16 = vld [vmem:[%s4077_s0 + $0x1f8] ss:$12 sps:$4 sm:$0xff]  }
 0x3a0   :  { %1939 = vmatmul.mubr.bf16.gmra.mrb[120].mxu1 %v3056_v21 }
 0x3a1   :  { %1946 = vmatprep.mubr.bf16.mxu1 %v3057_v59 }
 0x3a3   :  { %v2840_v22 = vpop.f32.mrb[140].mxu0 }
 0x3a4   :  { %v1812_v24 = vpop.f32.mrb[141].mxu0 }
 0x3a5   :  { %v2841_v28 = vpop.f32.mrb[142].mxu0 }
 0x3a6   :  { %v1850_v0 = vpack.c.bf16 %v2841_v28, %v2840_v22  ;;  %v1815_v27 = vpop.f32.mrb[143].mxu0 }
 0x3a7   :  { %v1849_v29 = vpack.c.bf16 %v1815_v27, %v1812_v24 }
 0x3a8   :  { %1947 = vmatmul.mubr.bf16.gmra.mrb[124].mxu1 %v3058_v35 }
 0x3a9   :  { %2854 = vmatprep.subr.bf16.mxu0 %v1849_v29  ;;  %1954 = vmatprep.mubr.bf16.mxu1 %v3059_v36 }
 0x3aa   :  { %2855 = vmatpush3.bf16.msra.mxu0 %v1849_v29 }
 0x3ab   :  { %2856 = vmatprep.subr.bf16.mxu0 %v1850_v0 }
 0x3ae   :  { %2857 = vmatpush3.bf16.msra.mxu0 %v1850_v0 }
 0x3b0   :  { %1955 = vmatmul.mubr.bf16.gmra.mrb[128].mxu1 %v3060_v37 }
 0x3b1   :  { %2859 = vmatmul.mubr.bf16.vlgmr.msra.gmra.mrb[144].mxu0 %v3061_v57  ;;  %1962 = vmatprep.mubr.bf16.mxu1 %v3062_v38 }
 0x3b2   :  { %2862 = vmatprep.mubr.bf16.mxu0 %v3063_v39 }
 0x3b8   :  { %1963 = vmatmul.mubr.bf16.gmra.mrb[132].mxu1 %v3064_v40 }
 0x3b9   :  { %2863 = vmatmul.mubr.bf16.gmra.mrb[148].mxu0 %v3065_v63  ;;  %1970 = vmatprep.mubr.bf16.mxu1 %v3066_v41 }
 0x3ba   :  { %2866 = vmatprep.mubr.bf16.mxu0 %v3067_v43 }
 0x3c0   :  { %1971 = vmatmul.mubr.bf16.gmra.mrb[136].mxu1 %v3068_v25 }
 0x3c1   :  { %2867 = vmatmul.mubr.bf16.gmra.mrb[152].mxu0 %v3069_v45  ;;  %1978 = vmatprep.mubr.bf16.mxu1 %v3070_v46 }
 0x3c2   :  { %2870 = vmatprep.mubr.bf16.mxu0 %v3071_v47 }
 0x3c8   :  { %1979 = vmatmul.mubr.bf16.gmra.mrb[140].mxu1 %v3072_v50 }
 0x3c9   :  { %2871 = vmatmul.mubr.bf16.gmra.mrb[156].mxu0 %v3073_v10  ;;  %1986 = vmatprep.mubr.bf16.mxu1 %v3074_v51 }
 0x3ca   :  { %2874 = vmatprep.mubr.bf16.mxu0 %v3075_v52 }
 0x3d0   :  { %1987 = vmatmul.mubr.bf16.gmra.mrb[144].mxu1 %v3076_v31 }
 0x3d1   :  { %2875 = vmatmul.mubr.bf16.gmra.mrb[160].mxu0 %v3077_v15  ;;  %1994 = vmatprep.mubr.bf16.mxu1 %v3078_v53 }
 0x3d2   :  { %2878 = vmatprep.mubr.bf16.mxu0 %v3079_v54 }
 0x3d8   :  { %1995 = vmatmul.mubr.bf16.gmra.mrb[148].mxu1 %v3080_v55 }
 0x3d9   :  { %2879 = vmatmul.mubr.bf16.gmra.mrb[164].mxu0 %v3081_v56  ;;  %2002 = vmatprep.mubr.bf16.mxu1 %v3082_v58  ;;  %v3856_v58 = vld [vmem:[%s4080_s5] ss:$0 sm:$0xff] }
 0x3da   :  { %2882 = vmatprep.mubr.bf16.mxu0 %v3083_v8 }
 0x3e0   :  { %2003 = vmatmul.mubr.bf16.gmra.mrb[152].mxu1 %v3084_v60 }
 0x3e1   :  { %2883 = vmatmul.mubr.bf16.gmra.mrb[168].mxu0 %v3085_v61  ;;  %2010 = vmatprep.mubr.bf16.mxu1 %v3086_v62 }
 0x3e2   :  { %2886 = vmatprep.mubr.bf16.mxu0 %v3087_v14 }
 0x3e8   :  { %2011 = vmatmul.mubr.bf16.gmra.mrb[156].mxu1 %v3088_v44 }
 0x3e9   :  { %2887 = vmatmul.mubr.bf16.gmra.mrb[172].mxu0 %v3089_v1  ;;  %2018 = vmatprep.mubr.bf16.mxu1 %v3090_v2 }
 0x3ea   :  { %2890 = vmatprep.mubr.bf16.mxu0 %v3091_v49 }
 0x3f0   :  { %2019 = vmatmul.mubr.bf16.gmra.mrb[160].mxu1 %v3092_v32 }
 0x3f1   :  { %2891 = vmatmul.mubr.bf16.gmra.mrb[176].mxu0 %v3093_v3  ;;  %2026 = vmatprep.mubr.bf16.mxu1 %v3094_v4 }
 0x3f2   :  { %2894 = vmatprep.mubr.bf16.mxu0 %v3095_v5 }
 0x3f8   :  { %2027 = vmatmul.mubr.bf16.gmra.mrb[164].mxu1 %v3096_v26 }
 0x3f9   :  { %2034 = vmatprep.mubr.bf16.mxu1 %v3097_v6  ;;  %2895 = vmatmul.mubr.bf16.gmra.mrb[180].mxu0 %v3098_v7 }
 0x3fa   :  { %2898 = vmatprep.mubr.bf16.mxu0 %v3099_v34 }
 0x400   :  { %2035 = vmatmul.mubr.bf16.gmra.mrb[168].mxu1 %v3100_v42 }
 0x401   :  { %2042 = vmatprep.mubr.bf16.mxu1 %v3101_v9  ;;  %2899 = vmatmul.mubr.bf16.gmra.mrb[184].mxu0 %v3102_v11 }
 0x402   :  { %2902 = vmatprep.mubr.bf16.mxu0 %v3103_v12 }
 0x408   :  { %2043 = vmatmul.mubr.bf16.gmra.mrb[172].mxu1 %v3104_v23 }
 0x409   :  { %2050 = vmatprep.mubr.bf16.mxu1 %v3105_v48  ;;  %2903 = vmatmul.mubr.bf16.gmra.mrb[188].mxu0 %v3106_v33 }
 0x410   :  { %2051 = vmatmul.mubr.bf16.gmra.mrb[176].mxu1 %v3107_v13 }
 0x411   :  { %2058 = vmatprep.mubr.bf16.mxu1 %v3108_v30 }
 0x418   :  { %2059 = vmatmul.mubr.bf16.gmra.mrb[180].mxu1 %v3109_v16 }
 0x419   :  { %2066 = vmatprep.mubr.bf16.mxu1 %v3110_v17 }
 0x420   :  { %2067 = vmatmul.mubr.bf16.gmra.mrb[184].mxu1 %v3111_v18 }
 0x421   :  { %2074 = vmatprep.mubr.bf16.mxu1 %v3112_v19 }
 0x428   :  { %2075 = vmatmul.mubr.bf16.gmra.mrb[188].mxu1 %v3113_v20 }
 0x443   :  { %v1892_v21 = vpop.f32.mrb[96].mxu1 }
 0x444   :  { %v1894_v59 = vpop.f32.mrb[97].mxu1  ;;  %v1893_v61 = vadd.f32 %v3856_v58, %v1892_v21 }
 0x445   :  { %v1895_v22 = vpop.f32.mrb[98].mxu1 }
 0x446   :  { %v1897_v24 = vpop.f32.mrb[99].mxu1  ;;  %v1896_v32 = vadd.f32 %v3856_v58, %v1895_v22 }
 0x44b   :  { %v1900_v28 = vpop.f32.mrb[100].mxu1 }
 0x44c   :  { %v1902_v0 = vpop.f32.mrb[101].mxu1  ;;  %v1901_v8 = vadd.f32 %v3856_v58, %v1900_v28 }
 0x44d   :  { %v1903_v27 = vpop.f32.mrb[102].mxu1 }
 0x44e   :  { %v1905_v29 = vpop.f32.mrb[103].mxu1  ;;  %v1904_v2 = vadd.f32 %v3856_v58, %v1903_v27 }
 0x453   :  { %v1908_v35 = vpop.f32.mrb[104].mxu1 }
 0x454   :  { %v1910_v36 = vpop.f32.mrb[105].mxu1  ;;  %v1909_v48 = vadd.f32 %v3856_v58, %v1908_v35 }
 0x455   :  { %v1911_v37 = vpop.f32.mrb[106].mxu1 }
 0x456   :  { %v1913_v57 = vpop.f32.mrb[107].mxu1  ;;  %v1912_v19 = vadd.f32 %v3856_v58, %v1911_v37 }
 0x45b   :  { %v1916_v38 = vpop.f32.mrb[108].mxu1 }
 0x45c   :  { %v1918_v39 = vpop.f32.mrb[109].mxu1  ;;  %v1917_v12 = vadd.f32 %v3856_v58, %v1916_v38 }
 0x45d   :  { %v1919_v40 = vpop.f32.mrb[110].mxu1 }
 0x45e   :  { %v1921_v63 = vpop.f32.mrb[111].mxu1  ;;  %v1920_v17 = vadd.f32 %v3856_v58, %v1919_v40 }
 0x463   :  { %v3839_v41 = vpop.f32.mrb[112].mxu1 }
 0x464   :  { %v1926_v43 = vpop.f32.mrb[113].mxu1  ;;  %v1925_v57 = vadd.f32 %v3856_v58, %v3839_v41 }
 0x465   :  { %v3841_v25 = vpop.f32.mrb[114].mxu1 }
 0x466   :  { %v1929_v45 = vpop.f32.mrb[115].mxu1 }
 0x46b   :  { %v1932_v46 = vpop.f32.mrb[116].mxu1 }
 0x46c   :  { %v1934_v47 = vpop.f32.mrb[117].mxu1  ;;  %v1933_v36 = vadd.f32 %v3856_v58, %v1932_v46  ;;  %v1928_v46 = vadd.f32 %v3856_v58, %v3841_v25 }
 0x46d   :  { %v3843_v50 = vpop.f32.mrb[118].mxu1 }
 0x46e   :  { %v1937_v10 = vpop.f32.mrb[119].mxu1  ;;  %v1936_v43 = vadd.f32 %v3856_v58, %v3843_v50 }
 0x473   :  { %v3845_v51 = vpop.f32.mrb[120].mxu1 }
 0x474   :  { %v1942_v52 = vpop.f32.mrb[121].mxu1 }
 0x475   :  { %v3847_v31 = vpop.f32.mrb[122].mxu1 }
 0x476   :  { %v1945_v15 = vpop.f32.mrb[123].mxu1 }
 0x47b   :  { %v3849_v53 = vpop.f32.mrb[124].mxu1 }
 0x47c   :  { %v1950_v54 = vpop.f32.mrb[125].mxu1  ;;  %v1949_v25 = vadd.f32 %v3856_v58, %v3849_v53 }
 0x47d   :  { %v3851_v55 = vpop.f32.mrb[126].mxu1 }
 0x47e   :  { %v1953_v56 = vpop.f32.mrb[127].mxu1 }
 0x483   :  { %v3859_v60 = vpop.f32.mrb[128].mxu1 }
 0x484   :  { %v2860_v62 = vpop.f32.mrb[144].mxu0  ;;  %v1958_v14 = vpop.f32.mrb[129].mxu1 }
 0x485   :  { %v2117_v44 = vpop.f32.mrb[145].mxu0  ;;  %v2126_v1 = vadd.f32 %v2860_v62, %v1901_v8  ;;  %v3863_v49 = vpop.f32.mrb[130].mxu1  ;;  %v1941_v14 = vadd.f32 %v3856_v58, %v3845_v51 }
 0x486   :  { %v2118_v3 = vadd.f32 %v2117_v44, %v1893_v61  ;;  %v2861_v4 = vpop.f32.mrb[146].mxu0  ;;  %v1961_v5 = vpop.f32.mrb[131].mxu1 }
 0x487   :  { %v2120_v26 = vpop.f32.mrb[147].mxu0  ;;  %v2310_v6 = vmax.f32 %v2126_v1, 0.0  ;;  %v2129_v7 = vadd.f32 %v2861_v4, %v1904_v2  ;;  %v1944_v5 = vadd.f32 %v3856_v58, %v3847_v31 }
 0x488   :  { %v2308_v34 = vmax.f32 %v2118_v3, 0.0  ;;  %v2121_v42 = vadd.f32 %v2120_v26, %v1896_v32  ;;  %v1952_v3 = vadd.f32 %v3856_v58, %v3851_v55 }
 0x489   :  { %2358 = vst [vmem:[%s4081_s6 + $0x10] sm:$0xff] %v2310_v6  ;;  %v2311_v9 = vmax.f32 %v2129_v7, 0.0 }
 0x48a   :  { %2356 = vst [vmem:[%s4081_s6] sm:$0xff] %v2308_v34  ;;  %v2309_v11 = vmax.f32 %v2121_v42, 0.0 }
 0x48b   :  { %2359 = vst [vmem:[%s4081_s6 + $0x18] sm:$0xff] %v2311_v9  ;;  %v3876_v23 = vpop.f32.mrb[132].mxu1 }
 0x48c   :  { %2357 = vst [vmem:[%s4081_s6 + $0x8] sm:$0xff] %v2309_v11  ;;  %v2864_v33 = vpop.f32.mrb[148].mxu0  ;;  %v1966_v13 = vpop.f32.mrb[133].mxu1  ;;  %v1965_v31 = vadd.f32 %v3856_v58, %v3876_v23 }
 0x48d   :  { %v2133_v30 = vpop.f32.mrb[149].mxu0  ;;  %v2142_v16 = vadd.f32 %v2864_v33, %v1917_v12  ;;  %v3883_v18 = vpop.f32.mrb[134].mxu1 }
 0x48e   :  { %v2134_v20 = vadd.f32 %v2133_v30, %v1909_v48  ;;  %v2865_v21 = vpop.f32.mrb[150].mxu0  ;;  %v1969_v59 = vpop.f32.mrb[135].mxu1  ;;  %v1957_v48 = vadd.f32 %v3856_v58, %v3859_v60 }
 0x48f   :  { %v2136_v22 = vpop.f32.mrb[151].mxu0  ;;  %v2314_v24 = vmax.f32 %v2142_v16, 0.0  ;;  %v2145_v28 = vadd.f32 %v2865_v21, %v1920_v17  ;;  %v1968_v17 = vadd.f32 %v3856_v58, %v3883_v18 }
 0x490   :  { %v2312_v0 = vmax.f32 %v2134_v20, 0.0  ;;  %v2137_v27 = vadd.f32 %v2136_v22, %v1912_v19  ;;  %v1960_v20 = vadd.f32 %v3856_v58, %v3863_v49 }
 0x491   :  { %2362 = vst [vmem:[%s4081_s6 + $0x30] sm:$0xff] %v2314_v24  ;;  %v2315_v29 = vmax.f32 %v2145_v28, 0.0 }
 0x492   :  { %2360 = vst [vmem:[%s4081_s6 + $0x20] sm:$0xff] %v2312_v0  ;;  %v2313_v35 = vmax.f32 %v2137_v27, 0.0 }
 0x493   :  { %2363 = vst [vmem:[%s4081_s6 + $0x38] sm:$0xff] %v2315_v29  ;;  %v3896_v37 = vpop.f32.mrb[136].mxu1 }
 0x494   :  { %2361 = vst [vmem:[%s4081_s6 + $0x28] sm:$0xff] %v2313_v35  ;;  %v2868_v38 = vpop.f32.mrb[152].mxu0  ;;  %v1974_v39 = vpop.f32.mrb[137].mxu1  ;;  %v1973_v35 = vadd.f32 %v3856_v58, %v3896_v37 }
 0x495   :  { %v2149_v40 = vpop.f32.mrb[153].mxu0  ;;  %v2158_v63 = vadd.f32 %v2868_v38, %v1933_v36  ;;  %v3905_v45 = vpop.f32.mrb[138].mxu1 }
 0x496   :  { %v2150_v47 = vadd.f32 %v2149_v40, %v1925_v57  ;;  %v2869_v10 = vpop.f32.mrb[154].mxu0  ;;  %v1977_v52 = vpop.f32.mrb[139].mxu1 }
 0x497   :  { %v2152_v15 = vpop.f32.mrb[155].mxu0  ;;  %v2318_v54 = vmax.f32 %v2158_v63, 0.0  ;;  %v2161_v56 = vadd.f32 %v2869_v10, %v1936_v43  ;;  %v1976_v43 = vadd.f32 %v3856_v58, %v3905_v45 }
 0x498   :  { %v2316_v8 = vmax.f32 %v2150_v47, 0.0  ;;  %v2153_v41 = vadd.f32 %v2152_v15, %v1928_v46 }
 0x499   :  { %2366 = vst [vmem:[%s4081_s6 + $0x50] sm:$0xff] %v2318_v54  ;;  %v2319_v61 = vmax.f32 %v2161_v56, 0.0 }
 0x49a   :  { %2364 = vst [vmem:[%s4081_s6 + $0x40] sm:$0xff] %v2316_v8  ;;  %v2317_v50 = vmax.f32 %v2153_v41, 0.0 }
 0x49b   :  { %2367 = vst [vmem:[%s4081_s6 + $0x58] sm:$0xff] %v2319_v61  ;;  %v1980_v62 = vpop.f32.mrb[140].mxu1 }
 0x49c   :  { %2365 = vst [vmem:[%s4081_s6 + $0x48] sm:$0xff] %v2317_v50  ;;  %v2872_v44 = vpop.f32.mrb[156].mxu0  ;;  %v1982_v1 = vpop.f32.mrb[141].mxu1  ;;  %v1981_v49 = vadd.f32 %v3856_v58, %v1980_v62 }
 0x49d   :  { %v2165_v2 = vpop.f32.mrb[157].mxu0  ;;  %v2174_v32 = vadd.f32 %v2872_v44, %v1949_v25  ;;  %v1983_v4 = vpop.f32.mrb[142].mxu1 }
 0x49e   :  { %v2166_v53 = vadd.f32 %v2165_v2, %v1941_v14  ;;  %v2873_v26 = vpop.f32.mrb[158].mxu0  ;;  %v1985_v6 = vpop.f32.mrb[143].mxu1  ;;  %v1984_v40 = vadd.f32 %v3856_v58, %v1983_v4 }
 0x49f   :  { %v2168_v7 = vpop.f32.mrb[159].mxu0  ;;  %v2322_v34 = vmax.f32 %v2174_v32, 0.0  ;;  %v2177_v42 = vadd.f32 %v2873_v26, %v1952_v3 }
 0x4a0   :  { %v2320_v9 = vmax.f32 %v2166_v53, 0.0  ;;  %v2169_v11 = vadd.f32 %v2168_v7, %v1944_v5 }
 0x4a1   :  { %2370 = vst [vmem:[%s4081_s6 + $0x70] sm:$0xff] %v2322_v34  ;;  %v2323_v51 = vmax.f32 %v2177_v42, 0.0 }
 0x4a2   :  { %2368 = vst [vmem:[%s4081_s6 + $0x60] sm:$0xff] %v2320_v9  ;;  %v2321_v55 = vmax.f32 %v2169_v11, 0.0 }
 0x4a3   :  { %2371 = vst [vmem:[%s4081_s6 + $0x78] sm:$0xff] %v2323_v51  ;;  %v1988_v12 = vpop.f32.mrb[144].mxu1 }
 0x4a4   :  { %2369 = vst [vmem:[%s4081_s6 + $0x68] sm:$0xff] %v2321_v55  ;;  %v2876_v33 = vpop.f32.mrb[160].mxu0  ;;  %v1990_v13 = vpop.f32.mrb[145].mxu1  ;;  %v1989_v50 = vadd.f32 %v3856_v58, %v1988_v12 }
 0x4a5   :  { %v2181_v30 = vpop.f32.mrb[161].mxu0  ;;  %v2190_v16 = vadd.f32 %v2876_v33, %v1965_v31  ;;  %v1991_v19 = vpop.f32.mrb[146].mxu1 }
 0x4a6   :  { %v2182_v23 = vadd.f32 %v2181_v30, %v1957_v48  ;;  %v2877_v21 = vpop.f32.mrb[162].mxu0  ;;  %v1993_v59 = vpop.f32.mrb[147].mxu1  ;;  %v1992_v32 = vadd.f32 %v3856_v58, %v1991_v19 }
 0x4a7   :  { %v2184_v22 = vpop.f32.mrb[163].mxu0  ;;  %v2326_v24 = vmax.f32 %v2190_v16, 0.0  ;;  %v2193_v28 = vadd.f32 %v2877_v21, %v1968_v17 }
 0x4a8   :  { %v2324_v0 = vmax.f32 %v2182_v23, 0.0  ;;  %v2185_v27 = vadd.f32 %v2184_v22, %v1960_v20 }
 0x4a9   :  { %2374 = vst [vmem:[%s4081_s6 + $0x90] sm:$0xff] %v2326_v24  ;;  %v2327_v60 = vmax.f32 %v2193_v28, 0.0 }
 0x4aa   :  { %2372 = vst [vmem:[%s4081_s6 + $0x80] sm:$0xff] %v2324_v0  ;;  %v2325_v18 = vmax.f32 %v2185_v27, 0.0 }
 0x4ab   :  { %2375 = vst [vmem:[%s4081_s6 + $0x98] sm:$0xff] %v2327_v60  ;;  %v1996_v29 = vpop.f32.mrb[148].mxu1 }
 0x4ac   :  { %2373 = vst [vmem:[%s4081_s6 + $0x88] sm:$0xff] %v2325_v18  ;;  %v2880_v36 = vpop.f32.mrb[164].mxu0  ;;  %v1998_v57 = vpop.f32.mrb[149].mxu1  ;;  %v1997_v45 = vadd.f32 %v3856_v58, %v1996_v29 }
 0x4ad   :  { %v2197_v38 = vpop.f32.mrb[165].mxu0  ;;  %v2206_v39 = vadd.f32 %v2880_v36, %v1981_v49  ;;  %v1999_v63 = vpop.f32.mrb[150].mxu1 }
 0x4ae   :  { %v2198_v46 = vadd.f32 %v2197_v38, %v1973_v35  ;;  %v2881_v47 = vpop.f32.mrb[166].mxu0  ;;  %v2001_v10 = vpop.f32.mrb[151].mxu1  ;;  %v2000_v1 = vadd.f32 %v3856_v58, %v1999_v63 }
 0x4af   :  { %v2200_v52 = vpop.f32.mrb[167].mxu0  ;;  %v2330_v15 = vmax.f32 %v2206_v39, 0.0  ;;  %v2209_v54 = vadd.f32 %v2881_v47, %v1984_v40 }
 0x4b0   :  { %v2328_v56 = vmax.f32 %v2198_v46, 0.0  ;;  %v2201_v8 = vadd.f32 %v2200_v52, %v1976_v43 }
 0x4b1   :  { %2378 = vst [vmem:[%s4081_s6 + $0xb0] sm:$0xff] %v2330_v15  ;;  %v2331_v37 = vmax.f32 %v2209_v54, 0.0 }
 0x4b2   :  { %2376 = vst [vmem:[%s4081_s6 + $0xa0] sm:$0xff] %v2328_v56  ;;  %v2329_v41 = vmax.f32 %v2201_v8, 0.0 }
 0x4b3   :  { %2379 = vst [vmem:[%s4081_s6 + $0xb8] sm:$0xff] %v2331_v37  ;;  %v2004_v61 = vpop.f32.mrb[152].mxu1 }
 0x4b4   :  { %2377 = vst [vmem:[%s4081_s6 + $0xa8] sm:$0xff] %v2329_v41  ;;  %v2884_v25 = vpop.f32.mrb[168].mxu0  ;;  %v2006_v62 = vpop.f32.mrb[153].mxu1  ;;  %v2005_v51 = vadd.f32 %v3856_v58, %v2004_v61 }
 0x4b5   :  { %v2213_v14 = vpop.f32.mrb[169].mxu0  ;;  %v2222_v44 = vadd.f32 %v2884_v25, %v1997_v45  ;;  %v2007_v2 = vpop.f32.mrb[154].mxu1 }
 0x4b6   :  { %v2214_v3 = vadd.f32 %v2213_v14, %v1989_v50  ;;  %v2885_v4 = vpop.f32.mrb[170].mxu0  ;;  %v2009_v5 = vpop.f32.mrb[155].mxu1  ;;  %v2008_v13 = vadd.f32 %v3856_v58, %v2007_v2 }
 0x4b7   :  { %v2216_v53 = vpop.f32.mrb[171].mxu0  ;;  %v2334_v26 = vmax.f32 %v2222_v44, 0.0  ;;  %v2225_v6 = vadd.f32 %v2885_v4, %v2000_v1 }
 0x4b8   :  { %v2332_v7 = vmax.f32 %v2214_v3, 0.0  ;;  %v2217_v34 = vadd.f32 %v2216_v53, %v1992_v32 }
 0x4b9   :  { %2382 = vst [vmem:[%s4081_s6 + $0xd0] sm:$0xff] %v2334_v26  ;;  %v2335_v42 = vmax.f32 %v2225_v6, 0.0 }
 0x4ba   :  { %2380 = vst [vmem:[%s4081_s6 + $0xc0] sm:$0xff] %v2332_v7  ;;  %v2333_v9 = vmax.f32 %v2217_v34, 0.0 }
 0x4bb   :  { %2383 = vst [vmem:[%s4081_s6 + $0xd8] sm:$0xff] %v2335_v42  ;;  %v2012_v11 = vpop.f32.mrb[156].mxu1 }
 0x4bc   :  { %2381 = vst [vmem:[%s4081_s6 + $0xc8] sm:$0xff] %v2333_v9  ;;  %v2888_v55 = vpop.f32.mrb[172].mxu0  ;;  %v2013_v31 = vadd.f32 %v3856_v58, %v2012_v11  ;;  %v2014_v12 = vpop.f32.mrb[157].mxu1 }
 0x4bd   :  { %v2229_v48 = vpop.f32.mrb[173].mxu0  ;;  %v2015_v33 = vpop.f32.mrb[158].mxu1 }
 0x4be   :  { %v2230_v30 = vadd.f32 %v2229_v48, %v2005_v51  ;;  %v2889_v16 = vpop.f32.mrb[174].mxu0  ;;  %v2238_v17 = vadd.f32 %v2888_v55, %v2013_v31  ;;  %v2016_v19 = vadd.f32 %v3856_v58, %v2015_v33  ;;  %v2017_v20 = vpop.f32.mrb[159].mxu1 }
 0x4bf   :  { %v2232_v23 = vpop.f32.mrb[175].mxu0 }
 0x4c0   :  { %v2336_v21 = vmax.f32 %v2230_v30, 0.0  ;;  %v2233_v59 = vadd.f32 %v2232_v23, %v2008_v13  ;;  %v2338_v22 = vmax.f32 %v2238_v17, 0.0  ;;  %v2241_v24 = vadd.f32 %v2889_v16, %v2016_v19 }
 0x4c2   :  { %2384 = vst [vmem:[%s4081_s6 + $0xe0] sm:$0xff] %v2336_v21  ;;  %v2337_v28 = vmax.f32 %v2233_v59, 0.0  ;;  %2386 = vst [vmem:[%s4081_s6 + $0xf0] sm:$0xff] %v2338_v22  ;;  %v2339_v0 = vmax.f32 %v2241_v24, 0.0 }
 0x4c3   :  { %v2020_v27 = vpop.f32.mrb[160].mxu1 }
 0x4c4   :  { %2385 = vst [vmem:[%s4081_s6 + $0xe8] sm:$0xff] %v2337_v28  ;;  %2387 = vst [vmem:[%s4081_s6 + $0xf8] sm:$0xff] %v2339_v0  ;;  %v2021_v60 = vadd.f32 %v3856_v58, %v2020_v27  ;;  %v2022_v18 = vpop.f32.mrb[161].mxu1  ;;  %v2892_v49 = vpop.f32.mrb[176].mxu0 }
 0x4c5   :  { %v2023_v29 = vpop.f32.mrb[162].mxu1  ;;  %v2245_v35 = vpop.f32.mrb[177].mxu0 }
 0x4c6   :  { %v2024_v36 = vadd.f32 %v3856_v58, %v2023_v29  ;;  %v2025_v57 = vpop.f32.mrb[163].mxu1  ;;  %v2246_v38 = vadd.f32 %v2245_v35, %v2021_v60  ;;  %v2893_v39 = vpop.f32.mrb[178].mxu0 }
 0x4c7   :  { %v2248_v40 = vpop.f32.mrb[179].mxu0 }
 0x4c8   :  { %v2340_v63 = vmax.f32 %v2246_v38, 0.0  ;;  %v2249_v43 = vadd.f32 %v2248_v40, %v2024_v36 }
 0x4ca   :  { %2388 = vst [vmem:[%s4081_s6 + $0x100] sm:$0xff] %v2340_v63  ;;  %v2341_v46 = vmax.f32 %v2249_v43, 0.0 }
 0x4cb   :  { %v2028_v47 = vpop.f32.mrb[164].mxu1 }
 0x4cc   :  { %2389 = vst [vmem:[%s4081_s6 + $0x108] sm:$0xff] %v2341_v46  ;;  %v2029_v10 = vadd.f32 %v3856_v58, %v2028_v47  ;;  %v2030_v52 = vpop.f32.mrb[165].mxu1  ;;  %v2896_v15 = vpop.f32.mrb[180].mxu0 }
 0x4cd   :  { %v2031_v54 = vpop.f32.mrb[166].mxu1  ;;  %v2261_v56 = vpop.f32.mrb[181].mxu0 }
 0x4ce   :  { %v2254_v8 = vadd.f32 %v2892_v49, %v2029_v10  ;;  %v2032_v37 = vadd.f32 %v3856_v58, %v2031_v54  ;;  %v2033_v41 = vpop.f32.mrb[167].mxu1  ;;  %v2897_v45 = vpop.f32.mrb[182].mxu0 }
 0x4cf   :  { %v2264_v61 = vpop.f32.mrb[183].mxu0 }
 0x4d0   :  { %v2342_v50 = vmax.f32 %v2254_v8, 0.0  ;;  %v2257_v25 = vadd.f32 %v2893_v39, %v2032_v37 }
 0x4d2   :  { %2390 = vst [vmem:[%s4081_s6 + $0x110] sm:$0xff] %v2342_v50  ;;  %v2343_v62 = vmax.f32 %v2257_v25, 0.0 }
 0x4d3   :  { %v2036_v14 = vpop.f32.mrb[168].mxu1 }
 0x4d4   :  { %2391 = vst [vmem:[%s4081_s6 + $0x118] sm:$0xff] %v2343_v62  ;;  %v2037_v44 = vadd.f32 %v3856_v58, %v2036_v14  ;;  %v2038_v1 = vpop.f32.mrb[169].mxu1  ;;  %v2900_v2 = vpop.f32.mrb[184].mxu0 }
 0x4d5   :  { %v2039_v32 = vpop.f32.mrb[170].mxu1  ;;  %v2277_v3 = vpop.f32.mrb[185].mxu0 }
 0x4d6   :  { %v2040_v4 = vadd.f32 %v3856_v58, %v2039_v32  ;;  %v2041_v5 = vpop.f32.mrb[171].mxu1  ;;  %v2262_v53 = vadd.f32 %v2261_v56, %v2037_v44  ;;  %v2901_v26 = vpop.f32.mrb[186].mxu0 }
 0x4d7   :  { %v2280_v6 = vpop.f32.mrb[187].mxu0 }
 0x4d8   :  { %v2344_v7 = vmax.f32 %v2262_v53, 0.0  ;;  %v2265_v34 = vadd.f32 %v2264_v61, %v2040_v4 }
 0x4da   :  { %2392 = vst [vmem:[%s4081_s6 + $0x120] sm:$0xff] %v2344_v7  ;;  %v2345_v42 = vmax.f32 %v2265_v34, 0.0 }
 0x4db   :  { %v2044_v9 = vpop.f32.mrb[172].mxu1 }
 0x4dc   :  { %2393 = vst [vmem:[%s4081_s6 + $0x128] sm:$0xff] %v2345_v42  ;;  %v2045_v11 = vadd.f32 %v3856_v58, %v2044_v9  ;;  %v2046_v51 = vpop.f32.mrb[173].mxu1  ;;  %v2904_v55 = vpop.f32.mrb[188].mxu0 }
 0x4dd   :  { %v2047_v31 = vpop.f32.mrb[174].mxu1  ;;  %v2293_v12 = vpop.f32.mrb[189].mxu0 }
 0x4de   :  { %v2270_v48 = vadd.f32 %v2896_v15, %v2045_v11  ;;  %v2048_v33 = vadd.f32 %v3856_v58, %v2047_v31  ;;  %v2049_v13 = vpop.f32.mrb[175].mxu1  ;;  %v2905_v30 = vpop.f32.mrb[190].mxu0 }
 0x4df   :  { %v2296_v16 = vpop.f32.mrb[191].mxu0 }
 0x4e0   :  { %v2346_v17 = vmax.f32 %v2270_v48, 0.0  ;;  %v2273_v19 = vadd.f32 %v2897_v45, %v2048_v33 }
 0x4e2   :  { %2394 = vst [vmem:[%s4081_s6 + $0x130] sm:$0xff] %v2346_v17  ;;  %v2347_v20 = vmax.f32 %v2273_v19, 0.0 }
 0x4e3   :  { %v2052_v23 = vpop.f32.mrb[176].mxu1 }
 0x4e4   :  { %2395 = vst [vmem:[%s4081_s6 + $0x138] sm:$0xff] %v2347_v20  ;;  %v2053_v21 = vadd.f32 %v3856_v58, %v2052_v23  ;;  %v2054_v59 = vpop.f32.mrb[177].mxu1 }
 0x4e5   :  { %v2055_v22 = vpop.f32.mrb[178].mxu1 }
 0x4e6   :  { %v2056_v24 = vadd.f32 %v3856_v58, %v2055_v22  ;;  %v2057_v28 = vpop.f32.mrb[179].mxu1  ;;  %v2278_v0 = vadd.f32 %v2277_v3, %v2053_v21 }
 0x4e8   :  { %v2348_v27 = vmax.f32 %v2278_v0, 0.0  ;;  %v2281_v60 = vadd.f32 %v2280_v6, %v2056_v24 }
 0x4ea   :  { %2396 = vst [vmem:[%s4081_s6 + $0x140] sm:$0xff] %v2348_v27  ;;  %v2349_v18 = vmax.f32 %v2281_v60, 0.0 }
 0x4eb   :  { %v2060_v49 = vpop.f32.mrb[180].mxu1 }
 0x4ec   :  { %2397 = vst [vmem:[%s4081_s6 + $0x148] sm:$0xff] %v2349_v18  ;;  %v2061_v29 = vadd.f32 %v3856_v58, %v2060_v49  ;;  %v2062_v35 = vpop.f32.mrb[181].mxu1 }
 0x4ed   :  { %v2063_v36 = vpop.f32.mrb[182].mxu1 }
 0x4ee   :  { %v2286_v57 = vadd.f32 %v2900_v2, %v2061_v29  ;;  %v2064_v38 = vadd.f32 %v3856_v58, %v2063_v36  ;;  %v2065_v39 = vpop.f32.mrb[183].mxu1 }
 0x4f0   :  { %v2350_v40 = vmax.f32 %v2286_v57, 0.0  ;;  %v2289_v63 = vadd.f32 %v2901_v26, %v2064_v38 }
 0x4f2   :  { %2398 = vst [vmem:[%s4081_s6 + $0x150] sm:$0xff] %v2350_v40  ;;  %v2351_v43 = vmax.f32 %v2289_v63, 0.0 }
 0x4f3   :  { %v2068_v46 = vpop.f32.mrb[184].mxu1 }
 0x4f4   :  { %2399 = vst [vmem:[%s4081_s6 + $0x158] sm:$0xff] %v2351_v43  ;;  %v2069_v47 = vadd.f32 %v3856_v58, %v2068_v46  ;;  %v2070_v10 = vpop.f32.mrb[185].mxu1 }
 0x4f5   :  { %v2071_v52 = vpop.f32.mrb[186].mxu1 }
 0x4f6   :  { %v2072_v15 = vadd.f32 %v3856_v58, %v2071_v52  ;;  %v2073_v54 = vpop.f32.mrb[187].mxu1  ;;  %v2294_v56 = vadd.f32 %v2293_v12, %v2069_v47 }
 0x4f8   :  { %v2352_v8 = vmax.f32 %v2294_v56, 0.0  ;;  %v2297_v37 = vadd.f32 %v2296_v16, %v2072_v15 }
 0x4fa   :  { %2400 = vst [vmem:[%s4081_s6 + $0x160] sm:$0xff] %v2352_v8  ;;  %v2353_v41 = vmax.f32 %v2297_v37, 0.0 }
 0x4fb   :  { %v2076_v45 = vpop.f32.mrb[188].mxu1 }
 0x4fc   :  { %2401 = vst [vmem:[%s4081_s6 + $0x168] sm:$0xff] %v2353_v41  ;;  %v2077_v61 = vadd.f32 %v3856_v58, %v2076_v45  ;;  %v2078_v50 = vpop.f32.mrb[189].mxu1 }
 0x4fd   :  { %v2079_v25 = vpop.f32.mrb[190].mxu1 }
 0x4fe   :  { %v2302_v62 = vadd.f32 %v2904_v55, %v2077_v61  ;;  %v2080_v14 = vadd.f32 %v3856_v58, %v2079_v25  ;;  %v2081_v44 = vpop.f32.mrb[191].mxu1 }
 0x500   :  { %v2354_v1 = vmax.f32 %v2302_v62, 0.0  ;;  %v2305_v2 = vadd.f32 %v2905_v30, %v2080_v14 }
 0x502   :  { %2402 = vst [vmem:[%s4081_s6 + $0x170] sm:$0xff] %v2354_v1  ;;  %v2355_v32 = vmax.f32 %v2305_v2, 0.0 }
 0x504   :  { %2403 = vst [vmem:[%s4081_s6 + $0x178] sm:$0xff] %v2355_v32 }

</bundles_post_ra>
